<compile_context>
chip_gen: v6e
topology: v6e:2x2x1
jax: 0.10.0
libtpu: 0.0.40
codegen_flags: <defaults>
</compile_context>

<pallas_src>
import jax
import jax.numpy as jnp
from jax.experimental import pallas as pl
from jax.experimental.pallas import tpu as pltpu

# ---- model / problem sizes (small, consistent with the module) ----
B = 2        # batch
T = 8        # sequence length
D_IN = 16    # input_size
H = 32       # hidden_size
OUT = 1      # output_size
NUM_LAYERS = 2

# ---- packed-parameter buffer row layout (see pack_params) ----
_ROW_BBIG = 2 * H            # 64 : fused wave-dot bias (1, 8H)
_ROW_BIH0 = 2 * H + 1        # 65 : layer-0 b_ih (r|z|n) in cols 0:3H
_ROW_FC = 2 * H + 2          # 66 : fc weights in cols 0:H, fc bias in col H
_ROW_WIH0 = 72               # 72 : W_ih0^T (D_IN, 3H) in cols 0:3H
_P_ROWS = _ROW_WIH0 + D_IN   # 88 rows (multiple of 8), 8H = 256 cols


def _gru_kernel(x_ref, p_ref, out_ref):
    f32 = jnp.float32
    bf16 = jnp.bfloat16

    # ---- one-time loads / casts (prologue, off the recurrent critical path) ----
    wbig = p_ref[0:2 * H, :].astype(bf16)                       # (2H, 8H)
    bbig = p_ref[_ROW_BBIG:_ROW_BBIG + 1, :]                    # (1, 8H)  f32
    bih0 = p_ref[_ROW_BIH0:_ROW_BIH0 + 1, 0:4 * H]              # (1, 4H)  f32
    fc_w = p_ref[_ROW_FC:_ROW_FC + 1, 0:H]                      # (1, H)   f32
    fc_b = p_ref[_ROW_FC:_ROW_FC + 1, H:H + 1]                  # (1, 1)   f32
    wih0 = p_ref[_ROW_WIH0:_ROW_WIH0 + D_IN, 0:4 * H].astype(bf16)  # (D_IN, 4H)

    # Hoisted layer-0 input projection: every timestep in ONE off-path dot.
    x_bf = x_ref[...].astype(bf16)                              # (T*B, D_IN)
    gi0_all = jnp.dot(x_bf, wih0, preferred_element_type=f32) + bih0   # (T*B, 4H)

    h0 = jnp.zeros((B, H), f32)
    h1 = jnp.zeros((B, H), f32)

    # Wavefront recurrence: wave s computes layer-0 @ t=s and layer-1 @ t=s-1
    # from ONE (B, 2H) @ (2H, 8H) dot.  Column layout of the fused gate vector g:
    #   [0:3H)   : layer-0 gh (r|z|n)   = h0 @ W_hh0^T (+ b_hh0)
    #   [3H:4H)  : unused (zeros)
    #   [4H:6H)  : layer-1 r|z          = h0 @ W_ih1^T + h1 @ W_hh1^T (+ merged b)
    #   [6H:7H)  : layer-1 gi_n         = h0 @ W_ih1_n^T (+ b_ih1_n)
    #   [7H:8H)  : layer-1 gh_n         = h1 @ W_hh1_n^T (+ b_hh1_n)
    for s in range(T + 1):          # static unroll: T+1 = 9 wave steps
        if s == 0:
            g = bbig                # h0 = h1 = 0 -> the dot would contribute nothing
        else:
            hh = jnp.concatenate([h0, h1], axis=1).astype(bf16)   # (B, 2H)
            g = jnp.dot(hh, wbig, preferred_element_type=f32) + bbig

        if s < T:                   # layer 0, timestep s
            gi0 = gi0_all[s * B:(s + 1) * B, :]                    # (B, 4H)
            rz0 = jax.nn.sigmoid(gi0[:, 0:2 * H] + g[:, 0:2 * H])  # fused r|z
            n0 = jnp.tanh(gi0[:, 2 * H:3 * H]
                          + rz0[:, 0:H] * g[:, 2 * H:3 * H])
            z0 = rz0[:, H:2 * H]
            h0_next = (1.0 - z0) * n0 + z0 * h0
        else:
            h0_next = h0

        if s >= 1:                  # layer 1, timestep s - 1
            g1 = g[:, 4 * H:8 * H]
            rz1 = jax.nn.sigmoid(g1[:, 0:2 * H])                   # fused r|z
            n1 = jnp.tanh(g1[:, 2 * H:3 * H]
                          + rz1[:, 0:H] * g1[:, 3 * H:4 * H])
            z1 = rz1[:, H:2 * H]
            h1 = (1.0 - z1) * n1 + z1 * h1

        h0 = h0_next

    # Final FC (H -> 1) on VPU + lane reduce (no tiny serial MXU dot in the tail).
    logits = jnp.sum(h1 * fc_w, axis=-1, keepdims=True) + fc_b
    out_ref[...] = jax.nn.sigmoid(logits)


def pack_params(params):
    """Pack all GRU + FC parameters into ONE tile-aligned (88, 256) f32 buffer.

    Done once at init (not per forward call).  Fused wave-dot weight W_big
    occupies rows 0:2H:
      rows 0:H   (h0):  cols 0:3H  = W_hh0^T (r|z|n)   cols 4H:7H = W_ih1^T (r|z|n)
      rows H:2H  (h1):  cols 4H:6H = W_hh1^T (r|z)     cols 7H:8H = W_hh1^T (n)
    (zero blocks keep gi_n / gh_n separable so the r-gated n-term stays exact).
    """
    (wih0, whh0, bih0, bhh0, wih1, whh1, bih1, bhh1, fcw, fcb) = params

    P = jnp.zeros((_P_ROWS, 8 * H), jnp.float32)
    # W_big
    P = P.at[0:H, 0:3 * H].set(whh0.T)                           # h0 -> layer0 gh
    P = P.at[0:H, 4 * H:7 * H].set(wih1.T)                       # h0 -> layer1 gi
    P = P.at[H:2 * H, 4 * H:6 * H].set(whh1.T[:, 0:2 * H])       # h1 -> layer1 gh r|z
    P = P.at[H:2 * H, 7 * H:8 * H].set(whh1.T[:, 2 * H:3 * H])   # h1 -> layer1 gh n
    # b_big (added once after the fused dot)
    bbig = jnp.concatenate([
        bhh0,                                  # layer-0 gh biases (r|z|n)
        jnp.zeros((H,), jnp.float32),          # padding cols 3H:4H
        bih1[0:2 * H] + bhh1[0:2 * H],         # layer-1 merged r|z biases
        bih1[2 * H:3 * H],                     # layer-1 gi_n bias
        bhh1[2 * H:3 * H],                     # layer-1 gh_n bias
    ])
    P = P.at[_ROW_BBIG, :].set(bbig)
    # layer-0 input-projection bias (r|z|n)
    P = P.at[_ROW_BIH0, 0:3 * H].set(bih0)
    # FC row: weights in cols 0:H, bias in col H
    P = P.at[_ROW_FC, 0:H].set(fcw[0])
    P = P.at[_ROW_FC, H].set(fcb[0])
    # W_ih0^T for the hoisted input projection
    P = P.at[_ROW_WIH0:_ROW_WIH0 + D_IN, 0:3 * H].set(wih0.T)
    return P


@jax.jit
def gru_anomaly_detector_forward(x, packed):
    """x: (B, T, D_IN) float32 (batch_first, like PyTorch). Returns (B, 1)."""
    # Time-major (T*B, D_IN) so wave step s reads the contiguous row block
    # [s*B, (s+1)*B) of the hoisted input projection.
    x_tb = jnp.transpose(x, (1, 0, 2)).reshape(T * B, D_IN)

    vmem = lambda: pl.BlockSpec(memory_space=pltpu.MemorySpace.VMEM)

    # Gridless single invocation: whole problem (~90 KiB) resident in VMEM,
    # 2 input DMAs total.  (For many independent windows, add a leading
    # "parallel" grid axis to feed both v7x TensorCores.)
    return pl.pallas_call(
        _gru_kernel,
        out_shape=jax.ShapeDtypeStruct((B, OUT), jnp.float32),
        in_specs=[vmem(), vmem()],
        out_specs=vmem(),
    )(x_tb, packed)


def _init_params(key):
    """Deterministic init with PyTorch nn.GRU / nn.Linear shapes."""
    ks = jax.random.split(key, 10)
    s = 1.0 / jnp.sqrt(H)
    u = lambda k, shape: jax.random.uniform(k, shape, jnp.float32, -s, s)
    wih0 = u(ks[0], (3 * H, D_IN))
    whh0 = u(ks[1], (3 * H, H))
    bih0 = u(ks[2], (3 * H,))
    bhh0 = u(ks[3], (3 * H,))
    wih1 = u(ks[4], (3 * H, H))
    whh1 = u(ks[5], (3 * H, H))
    bih1 = u(ks[6], (3 * H,))
    bhh1 = u(ks[7], (3 * H,))
    fcw = u(ks[8], (OUT, H))
    fcb = u(ks[9], (OUT,))
    return (wih0, whh0, bih0, bhh0, wih1, whh1, bih1, bhh1, fcw, fcb)


def _reference_forward(x, params, matmul_dtype=jnp.float32):
    """Pure-JAX reference with PyTorch GRU semantics.

    matmul_dtype=float32  -> true f32 (HIGHEST) matmuls (PyTorch numerics).
    matmul_dtype=bfloat16 -> matmul operands rounded to bf16 with f32
                             accumulation, matching the kernel's MXU numerics.
    """
    (wih0, whh0, bih0, bhh0, wih1, whh1, bih1, bhh1, fcw, fcb) = params

    def dot(a, b):
        return jnp.dot(a.astype(matmul_dtype), b.astype(matmul_dtype),
                       preferred_element_type=jnp.float32,
                       precision=jax.lax.Precision.HIGHEST)

    def cell(x_t, h, wih, whh, bih, bhh):
        gi = dot(x_t, wih.T) + bih
        gh = dot(h, whh.T) + bhh
        r = jax.nn.sigmoid(gi[:, 0:H] + gh[:, 0:H])
        z = jax.nn.sigmoid(gi[:, H:2 * H] + gh[:, H:2 * H])
        n = jnp.tanh(gi[:, 2 * H:] + r * gh[:, 2 * H:])
        return (1.0 - z) * n + z * h

    h0 = jnp.zeros((B, H), jnp.float32)
    h1 = jnp.zeros((B, H), jnp.float32)
    for t in range(T):
        h0 = cell(x[:, t, :], h0, wih0, whh0, bih0, bhh0)
        h1 = cell(h0, h1, wih1, whh1, bih1, bhh1)
    logits = jnp.dot(h1, fcw.T, preferred_element_type=jnp.float32,
                     precision=jax.lax.Precision.HIGHEST) + fcb
    return jax.nn.sigmoid(logits)


if __name__ == "__main__":
    key = jax.random.PRNGKey(0)
    kx, kp = jax.random.split(key)
    x = jax.random.normal(kx, (B, T, D_IN), jnp.float32)
    params = _init_params(kp)

    packed = pack_params(params)   # packed ONCE at init, reused every forward call

    out = gru_anomaly_detector_forward(x, packed)
    out = jax.block_until_ready(out)
    assert out.shape == (B, OUT)

    # Tight structural check: reference whose matmul operands are rounded to bf16
    # (matching the kernel's MXU numerics) must agree closely.
    ref_bf16 = _reference_forward(x, params, matmul_dtype=jnp.bfloat16)
    assert jnp.allclose(out, ref_bf16, atol=1e-4, rtol=1e-4), (out, ref_bf16)

    # Fidelity check vs. the full-f32 PyTorch-style reference (bf16-matmul tol).
    ref_f32 = _reference_forward(x, params, matmul_dtype=jnp.float32)
    assert jnp.allclose(out, ref_f32, atol=5e-3, rtol=5e-3), (out, ref_f32)

    print("KERNEL_OK")
</pallas_src>

<mosaic_0001>
module attributes {stable_mosaic.version = 11 : i64} {
  func.func @_gru_kernel(%arg0: memref<16x16xf32, #tpu.memory_space<vmem>>, %arg1: memref<88x256xf32, #tpu.memory_space<vmem>>, %arg2: memref<2x1xf32, #tpu.memory_space<vmem>>) attributes {dimension_semantics = [], scalar_prefetch = 0 : i64, scratch_operands = 0 : i64, tpu.core_type = #tpu.core_type<tc>} {
    %c0 = arith.constant 0 : index
    %c0_0 = arith.constant 0 : index
    %0 = vector.load %arg1[%c0, %c0_0] : memref<88x256xf32, #tpu.memory_space<vmem>>, vector<64x256xf32>
    %1 = arith.truncf %0 : vector<64x256xf32> to vector<64x256xbf16>
    %c64 = arith.constant 64 : index
    %c0_1 = arith.constant 0 : index
    %2 = vector.load %arg1[%c64, %c0_1] : memref<88x256xf32, #tpu.memory_space<vmem>>, vector<1x256xf32>
    %c65 = arith.constant 65 : index
    %c0_2 = arith.constant 0 : index
    %3 = vector.load %arg1[%c65, %c0_2] : memref<88x256xf32, #tpu.memory_space<vmem>>, vector<1x128xf32>
    %c66 = arith.constant 66 : index
    %c0_3 = arith.constant 0 : index
    %4 = vector.load %arg1[%c66, %c0_3] : memref<88x256xf32, #tpu.memory_space<vmem>>, vector<1x32xf32>
    %c66_4 = arith.constant 66 : index
    %c32 = arith.constant 32 : index
    %5 = vector.load %arg1[%c66_4, %c32] : memref<88x256xf32, #tpu.memory_space<vmem>>, vector<1x1xf32>
    %c72 = arith.constant 72 : index
    %c0_5 = arith.constant 0 : index
    %6 = vector.load %arg1[%c72, %c0_5] : memref<88x256xf32, #tpu.memory_space<vmem>>, vector<16x128xf32>
    %7 = arith.truncf %6 : vector<16x128xf32> to vector<16x128xbf16>
    %c0_6 = arith.constant 0 : index
    %c0_7 = arith.constant 0 : index
    %8 = vector.load %arg0[%c0_6, %c0_7] : memref<16x16xf32, #tpu.memory_space<vmem>>, vector<16x16xf32>
    %9 = arith.truncf %8 : vector<16x16xf32> to vector<16x16xbf16>
    %cst = arith.constant dense<0.000000e+00> : vector<16x128xf32>
    %10 = tpu.matmul %9, %7, %cst {dimension_numbers = #tpu.dot_dimension_numbers<[1], [0], [0], [1], [0, 0, 1, 1], [], []>} : vector<16x16xbf16>, vector<16x128xbf16>, vector<16x128xf32> -> vector<16x128xf32>
    %11 = vector.broadcast %3 : vector<1x128xf32> to vector<16x128xf32>
    %12 = arith.addf %10, %11 : vector<16x128xf32>
    %cst_8 = arith.constant 0.000000e+00 : f32
    %13 = vector.broadcast %cst_8 : f32 to vector<2x32xf32>
    %cst_9 = arith.constant 0.000000e+00 : f32
    %14 = vector.broadcast %cst_9 : f32 to vector<2x32xf32>
    %15 = vector.extract_strided_slice %12 {offsets = [0, 0], sizes = [2, 128], strides = [1, 1]} : vector<16x128xf32> to vector<2x128xf32>
    %16 = vector.extract_strided_slice %15 {offsets = [0, 0], sizes = [2, 64], strides = [1, 1]} : vector<2x128xf32> to vector<2x64xf32>
    %17 = vector.extract_strided_slice %2 {offsets = [0, 0], sizes = [1, 64], strides = [1, 1]} : vector<1x256xf32> to vector<1x64xf32>
    %18 = vector.broadcast %17 : vector<1x64xf32> to vector<2x64xf32>
    %19 = arith.addf %16, %18 : vector<2x64xf32>
    %20 = arith.negf %19 : vector<2x64xf32>
    %21 = math.exp %20 : vector<2x64xf32>
    %cst_10 = arith.constant 1.000000e+00 : f32
    %22 = vector.broadcast %cst_10 : f32 to vector<2x64xf32>
    %23 = arith.addf %22, %21 : vector<2x64xf32>
    %24 = arith.divf %22, %23 : vector<2x64xf32>
    %25 = vector.extract_strided_slice %15 {offsets = [0, 64], sizes = [2, 32], strides = [1, 1]} : vector<2x128xf32> to vector<2x32xf32>
    %26 = vector.extract_strided_slice %24 {offsets = [0, 0], sizes = [2, 32], strides = [1, 1]} : vector<2x64xf32> to vector<2x32xf32>
    %27 = vector.extract_strided_slice %2 {offsets = [0, 64], sizes = [1, 32], strides = [1, 1]} : vector<1x256xf32> to vector<1x32xf32>
    %28 = vector.broadcast %27 : vector<1x32xf32> to vector<2x32xf32>
    %29 = arith.mulf %26, %28 : vector<2x32xf32>
    %30 = arith.addf %25, %29 : vector<2x32xf32>
    %31 = math.tanh %30 : vector<2x32xf32>
    %32 = vector.extract_strided_slice %24 {offsets = [0, 32], sizes = [2, 32], strides = [1, 1]} : vector<2x64xf32> to vector<2x32xf32>
    %cst_11 = arith.constant 1.000000e+00 : f32
    %33 = vector.broadcast %cst_11 : f32 to vector<2x32xf32>
    %34 = arith.subf %33, %32 : vector<2x32xf32>
    %35 = arith.mulf %34, %31 : vector<2x32xf32>
    %36 = arith.mulf %32, %13 : vector<2x32xf32>
    %37 = arith.addf %35, %36 : vector<2x32xf32>
    %38 = tpu.concatenate %37, %14 in 1 : vector<2x32xf32>, vector<2x32xf32> -> vector<2x64xf32>
    %39 = arith.truncf %38 : vector<2x64xf32> to vector<2x64xbf16>
    %cst_12 = arith.constant dense<0.000000e+00> : vector<2x256xf32>
    %40 = tpu.matmul %39, %1, %cst_12 {dimension_numbers = #tpu.dot_dimension_numbers<[1], [0], [0], [1], [0, 0, 1, 1], [], []>} : vector<2x64xbf16>, vector<64x256xbf16>, vector<2x256xf32> -> vector<2x256xf32>
    %41 = vector.broadcast %2 : vector<1x256xf32> to vector<2x256xf32>
    %42 = arith.addf %40, %41 : vector<2x256xf32>
    %43 = vector.extract_strided_slice %12 {offsets = [2, 0], sizes = [2, 128], strides = [1, 1]} : vector<16x128xf32> to vector<2x128xf32>
    %44 = vector.extract_strided_slice %43 {offsets = [0, 0], sizes = [2, 64], strides = [1, 1]} : vector<2x128xf32> to vector<2x64xf32>
    %45 = vector.extract_strided_slice %42 {offsets = [0, 0], sizes = [2, 64], strides = [1, 1]} : vector<2x256xf32> to vector<2x64xf32>
    %46 = arith.addf %44, %45 : vector<2x64xf32>
    %47 = arith.negf %46 : vector<2x64xf32>
    %48 = math.exp %47 : vector<2x64xf32>
    %cst_13 = arith.constant 1.000000e+00 : f32
    %49 = vector.broadcast %cst_13 : f32 to vector<2x64xf32>
    %50 = arith.addf %49, %48 : vector<2x64xf32>
    %51 = arith.divf %49, %50 : vector<2x64xf32>
    %52 = vector.extract_strided_slice %43 {offsets = [0, 64], sizes = [2, 32], strides = [1, 1]} : vector<2x128xf32> to vector<2x32xf32>
    %53 = vector.extract_strided_slice %51 {offsets = [0, 0], sizes = [2, 32], strides = [1, 1]} : vector<2x64xf32> to vector<2x32xf32>
    %54 = vector.extract_strided_slice %42 {offsets = [0, 64], sizes = [2, 32], strides = [1, 1]} : vector<2x256xf32> to vector<2x32xf32>
    %55 = arith.mulf %53, %54 : vector<2x32xf32>
    %56 = arith.addf %52, %55 : vector<2x32xf32>
    %57 = math.tanh %56 : vector<2x32xf32>
    %58 = vector.extract_strided_slice %51 {offsets = [0, 32], sizes = [2, 32], strides = [1, 1]} : vector<2x64xf32> to vector<2x32xf32>
    %cst_14 = arith.constant 1.000000e+00 : f32
    %59 = vector.broadcast %cst_14 : f32 to vector<2x32xf32>
    %60 = arith.subf %59, %58 : vector<2x32xf32>
    %61 = arith.mulf %60, %57 : vector<2x32xf32>
    %62 = arith.mulf %58, %37 : vector<2x32xf32>
    %63 = arith.addf %61, %62 : vector<2x32xf32>
    %64 = vector.extract_strided_slice %42 {offsets = [0, 128], sizes = [2, 128], strides = [1, 1]} : vector<2x256xf32> to vector<2x128xf32>
    %65 = vector.extract_strided_slice %64 {offsets = [0, 0], sizes = [2, 64], strides = [1, 1]} : vector<2x128xf32> to vector<2x64xf32>
    %66 = arith.negf %65 : vector<2x64xf32>
    %67 = math.exp %66 : vector<2x64xf32>
    %cst_15 = arith.constant 1.000000e+00 : f32
    %68 = vector.broadcast %cst_15 : f32 to vector<2x64xf32>
    %69 = arith.addf %68, %67 : vector<2x64xf32>
    %70 = arith.divf %68, %69 : vector<2x64xf32>
    %71 = vector.extract_strided_slice %64 {offsets = [0, 64], sizes = [2, 32], strides = [1, 1]} : vector<2x128xf32> to vector<2x32xf32>
    %72 = vector.extract_strided_slice %70 {offsets = [0, 0], sizes = [2, 32], strides = [1, 1]} : vector<2x64xf32> to vector<2x32xf32>
    %73 = vector.extract_strided_slice %64 {offsets = [0, 96], sizes = [2, 32], strides = [1, 1]} : vector<2x128xf32> to vector<2x32xf32>
    %74 = arith.mulf %72, %73 : vector<2x32xf32>
    %75 = arith.addf %71, %74 : vector<2x32xf32>
    %76 = math.tanh %75 : vector<2x32xf32>
    %77 = vector.extract_strided_slice %70 {offsets = [0, 32], sizes = [2, 32], strides = [1, 1]} : vector<2x64xf32> to vector<2x32xf32>
    %cst_16 = arith.constant 1.000000e+00 : f32
    %78 = vector.broadcast %cst_16 : f32 to vector<2x32xf32>
    %79 = arith.subf %78, %77 : vector<2x32xf32>
    %80 = arith.mulf %79, %76 : vector<2x32xf32>
    %81 = arith.mulf %77, %14 : vector<2x32xf32>
    %82 = arith.addf %80, %81 : vector<2x32xf32>
    %83 = tpu.concatenate %63, %82 in 1 : vector<2x32xf32>, vector<2x32xf32> -> vector<2x64xf32>
    %84 = arith.truncf %83 : vector<2x64xf32> to vector<2x64xbf16>
    %cst_17 = arith.constant dense<0.000000e+00> : vector<2x256xf32>
    %85 = tpu.matmul %84, %1, %cst_17 {dimension_numbers = #tpu.dot_dimension_numbers<[1], [0], [0], [1], [0, 0, 1, 1], [], []>} : vector<2x64xbf16>, vector<64x256xbf16>, vector<2x256xf32> -> vector<2x256xf32>
    %86 = vector.broadcast %2 : vector<1x256xf32> to vector<2x256xf32>
    %87 = arith.addf %85, %86 : vector<2x256xf32>
    %88 = vector.extract_strided_slice %12 {offsets = [4, 0], sizes = [2, 128], strides = [1, 1]} : vector<16x128xf32> to vector<2x128xf32>
    %89 = vector.extract_strided_slice %88 {offsets = [0, 0], sizes = [2, 64], strides = [1, 1]} : vector<2x128xf32> to vector<2x64xf32>
    %90 = vector.extract_strided_slice %87 {offsets = [0, 0], sizes = [2, 64], strides = [1, 1]} : vector<2x256xf32> to vector<2x64xf32>
    %91 = arith.addf %89, %90 : vector<2x64xf32>
    %92 = arith.negf %91 : vector<2x64xf32>
    %93 = math.exp %92 : vector<2x64xf32>
    %cst_18 = arith.constant 1.000000e+00 : f32
    %94 = vector.broadcast %cst_18 : f32 to vector<2x64xf32>
    %95 = arith.addf %94, %93 : vector<2x64xf32>
    %96 = arith.divf %94, %95 : vector<2x64xf32>
    %97 = vector.extract_strided_slice %88 {offsets = [0, 64], sizes = [2, 32], strides = [1, 1]} : vector<2x128xf32> to vector<2x32xf32>
    %98 = vector.extract_strided_slice %96 {offsets = [0, 0], sizes = [2, 32], strides = [1, 1]} : vector<2x64xf32> to vector<2x32xf32>
    %99 = vector.extract_strided_slice %87 {offsets = [0, 64], sizes = [2, 32], strides = [1, 1]} : vector<2x256xf32> to vector<2x32xf32>
    %100 = arith.mulf %98, %99 : vector<2x32xf32>
    %101 = arith.addf %97, %100 : vector<2x32xf32>
    %102 = math.tanh %101 : vector<2x32xf32>
    %103 = vector.extract_strided_slice %96 {offsets = [0, 32], sizes = [2, 32], strides = [1, 1]} : vector<2x64xf32> to vector<2x32xf32>
    %cst_19 = arith.constant 1.000000e+00 : f32
    %104 = vector.broadcast %cst_19 : f32 to vector<2x32xf32>
    %105 = arith.subf %104, %103 : vector<2x32xf32>
    %106 = arith.mulf %105, %102 : vector<2x32xf32>
    %107 = arith.mulf %103, %63 : vector<2x32xf32>
    %108 = arith.addf %106, %107 : vector<2x32xf32>
    %109 = vector.extract_strided_slice %87 {offsets = [0, 128], sizes = [2, 128], strides = [1, 1]} : vector<2x256xf32> to vector<2x128xf32>
    %110 = vector.extract_strided_slice %109 {offsets = [0, 0], sizes = [2, 64], strides = [1, 1]} : vector<2x128xf32> to vector<2x64xf32>
    %111 = arith.negf %110 : vector<2x64xf32>
    %112 = math.exp %111 : vector<2x64xf32>
    %cst_20 = arith.constant 1.000000e+00 : f32
    %113 = vector.broadcast %cst_20 : f32 to vector<2x64xf32>
    %114 = arith.addf %113, %112 : vector<2x64xf32>
    %115 = arith.divf %113, %114 : vector<2x64xf32>
    %116 = vector.extract_strided_slice %109 {offsets = [0, 64], sizes = [2, 32], strides = [1, 1]} : vector<2x128xf32> to vector<2x32xf32>
    %117 = vector.extract_strided_slice %115 {offsets = [0, 0], sizes = [2, 32], strides = [1, 1]} : vector<2x64xf32> to vector<2x32xf32>
    %118 = vector.extract_strided_slice %109 {offsets = [0, 96], sizes = [2, 32], strides = [1, 1]} : vector<2x128xf32> to vector<2x32xf32>
    %119 = arith.mulf %117, %118 : vector<2x32xf32>
    %120 = arith.addf %116, %119 : vector<2x32xf32>
    %121 = math.tanh %120 : vector<2x32xf32>
    %122 = vector.extract_strided_slice %115 {offsets = [0, 32], sizes = [2, 32], strides = [1, 1]} : vector<2x64xf32> to vector<2x32xf32>
    %cst_21 = arith.constant 1.000000e+00 : f32
    %123 = vector.broadcast %cst_21 : f32 to vector<2x32xf32>
    %124 = arith.subf %123, %122 : vector<2x32xf32>
    %125 = arith.mulf %124, %121 : vector<2x32xf32>
    %126 = arith.mulf %122, %82 : vector<2x32xf32>
    %127 = arith.addf %125, %126 : vector<2x32xf32>
    %128 = tpu.concatenate %108, %127 in 1 : vector<2x32xf32>, vector<2x32xf32> -> vector<2x64xf32>
    %129 = arith.truncf %128 : vector<2x64xf32> to vector<2x64xbf16>
    %cst_22 = arith.constant dense<0.000000e+00> : vector<2x256xf32>
    %130 = tpu.matmul %129, %1, %cst_22 {dimension_numbers = #tpu.dot_dimension_numbers<[1], [0], [0], [1], [0, 0, 1, 1], [], []>} : vector<2x64xbf16>, vector<64x256xbf16>, vector<2x256xf32> -> vector<2x256xf32>
    %131 = vector.broadcast %2 : vector<1x256xf32> to vector<2x256xf32>
    %132 = arith.addf %130, %131 : vector<2x256xf32>
    %133 = vector.extract_strided_slice %12 {offsets = [6, 0], sizes = [2, 128], strides = [1, 1]} : vector<16x128xf32> to vector<2x128xf32>
    %134 = vector.extract_strided_slice %133 {offsets = [0, 0], sizes = [2, 64], strides = [1, 1]} : vector<2x128xf32> to vector<2x64xf32>
    %135 = vector.extract_strided_slice %132 {offsets = [0, 0], sizes = [2, 64], strides = [1, 1]} : vector<2x256xf32> to vector<2x64xf32>
    %136 = arith.addf %134, %135 : vector<2x64xf32>
    %137 = arith.negf %136 : vector<2x64xf32>
    %138 = math.exp %137 : vector<2x64xf32>
    %cst_23 = arith.constant 1.000000e+00 : f32
    %139 = vector.broadcast %cst_23 : f32 to vector<2x64xf32>
    %140 = arith.addf %139, %138 : vector<2x64xf32>
    %141 = arith.divf %139, %140 : vector<2x64xf32>
    %142 = vector.extract_strided_slice %133 {offsets = [0, 64], sizes = [2, 32], strides = [1, 1]} : vector<2x128xf32> to vector<2x32xf32>
    %143 = vector.extract_strided_slice %141 {offsets = [0, 0], sizes = [2, 32], strides = [1, 1]} : vector<2x64xf32> to vector<2x32xf32>
    %144 = vector.extract_strided_slice %132 {offsets = [0, 64], sizes = [2, 32], strides = [1, 1]} : vector<2x256xf32> to vector<2x32xf32>
    %145 = arith.mulf %143, %144 : vector<2x32xf32>
    %146 = arith.addf %142, %145 : vector<2x32xf32>
    %147 = math.tanh %146 : vector<2x32xf32>
    %148 = vector.extract_strided_slice %141 {offsets = [0, 32], sizes = [2, 32], strides = [1, 1]} : vector<2x64xf32> to vector<2x32xf32>
    %cst_24 = arith.constant 1.000000e+00 : f32
    %149 = vector.broadcast %cst_24 : f32 to vector<2x32xf32>
    %150 = arith.subf %149, %148 : vector<2x32xf32>
    %151 = arith.mulf %150, %147 : vector<2x32xf32>
    %152 = arith.mulf %148, %108 : vector<2x32xf32>
    %153 = arith.addf %151, %152 : vector<2x32xf32>
    %154 = vector.extract_strided_slice %132 {offsets = [0, 128], sizes = [2, 128], strides = [1, 1]} : vector<2x256xf32> to vector<2x128xf32>
    %155 = vector.extract_strided_slice %154 {offsets = [0, 0], sizes = [2, 64], strides = [1, 1]} : vector<2x128xf32> to vector<2x64xf32>
    %156 = arith.negf %155 : vector<2x64xf32>
    %157 = math.exp %156 : vector<2x64xf32>
    %cst_25 = arith.constant 1.000000e+00 : f32
    %158 = vector.broadcast %cst_25 : f32 to vector<2x64xf32>
    %159 = arith.addf %158, %157 : vector<2x64xf32>
    %160 = arith.divf %158, %159 : vector<2x64xf32>
    %161 = vector.extract_strided_slice %154 {offsets = [0, 64], sizes = [2, 32], strides = [1, 1]} : vector<2x128xf32> to vector<2x32xf32>
    %162 = vector.extract_strided_slice %160 {offsets = [0, 0], sizes = [2, 32], strides = [1, 1]} : vector<2x64xf32> to vector<2x32xf32>
    %163 = vector.extract_strided_slice %154 {offsets = [0, 96], sizes = [2, 32], strides = [1, 1]} : vector<2x128xf32> to vector<2x32xf32>
    %164 = arith.mulf %162, %163 : vector<2x32xf32>
    %165 = arith.addf %161, %164 : vector<2x32xf32>
    %166 = math.tanh %165 : vector<2x32xf32>
    %167 = vector.extract_strided_slice %160 {offsets = [0, 32], sizes = [2, 32], strides = [1, 1]} : vector<2x64xf32> to vector<2x32xf32>
    %cst_26 = arith.constant 1.000000e+00 : f32
    %168 = vector.broadcast %cst_26 : f32 to vector<2x32xf32>
    %169 = arith.subf %168, %167 : vector<2x32xf32>
    %170 = arith.mulf %169, %166 : vector<2x32xf32>
    %171 = arith.mulf %167, %127 : vector<2x32xf32>
    %172 = arith.addf %170, %171 : vector<2x32xf32>
    %173 = tpu.concatenate %153, %172 in 1 : vector<2x32xf32>, vector<2x32xf32> -> vector<2x64xf32>
    %174 = arith.truncf %173 : vector<2x64xf32> to vector<2x64xbf16>
    %cst_27 = arith.constant dense<0.000000e+00> : vector<2x256xf32>
    %175 = tpu.matmul %174, %1, %cst_27 {dimension_numbers = #tpu.dot_dimension_numbers<[1], [0], [0], [1], [0, 0, 1, 1], [], []>} : vector<2x64xbf16>, vector<64x256xbf16>, vector<2x256xf32> -> vector<2x256xf32>
    %176 = vector.broadcast %2 : vector<1x256xf32> to vector<2x256xf32>
    %177 = arith.addf %175, %176 : vector<2x256xf32>
    %178 = vector.extract_strided_slice %12 {offsets = [8, 0], sizes = [2, 128], strides = [1, 1]} : vector<16x128xf32> to vector<2x128xf32>
    %179 = vector.extract_strided_slice %178 {offsets = [0, 0], sizes = [2, 64], strides = [1, 1]} : vector<2x128xf32> to vector<2x64xf32>
    %180 = vector.extract_strided_slice %177 {offsets = [0, 0], sizes = [2, 64], strides = [1, 1]} : vector<2x256xf32> to vector<2x64xf32>
    %181 = arith.addf %179, %180 : vector<2x64xf32>
    %182 = arith.negf %181 : vector<2x64xf32>
    %183 = math.exp %182 : vector<2x64xf32>
    %cst_28 = arith.constant 1.000000e+00 : f32
    %184 = vector.broadcast %cst_28 : f32 to vector<2x64xf32>
    %185 = arith.addf %184, %183 : vector<2x64xf32>
    %186 = arith.divf %184, %185 : vector<2x64xf32>
    %187 = vector.extract_strided_slice %178 {offsets = [0, 64], sizes = [2, 32], strides = [1, 1]} : vector<2x128xf32> to vector<2x32xf32>
    %188 = vector.extract_strided_slice %186 {offsets = [0, 0], sizes = [2, 32], strides = [1, 1]} : vector<2x64xf32> to vector<2x32xf32>
    %189 = vector.extract_strided_slice %177 {offsets = [0, 64], sizes = [2, 32], strides = [1, 1]} : vector<2x256xf32> to vector<2x32xf32>
    %190 = arith.mulf %188, %189 : vector<2x32xf32>
    %191 = arith.addf %187, %190 : vector<2x32xf32>
    %192 = math.tanh %191 : vector<2x32xf32>
    %193 = vector.extract_strided_slice %186 {offsets = [0, 32], sizes = [2, 32], strides = [1, 1]} : vector<2x64xf32> to vector<2x32xf32>
    %cst_29 = arith.constant 1.000000e+00 : f32
    %194 = vector.broadcast %cst_29 : f32 to vector<2x32xf32>
    %195 = arith.subf %194, %193 : vector<2x32xf32>
    %196 = arith.mulf %195, %192 : vector<2x32xf32>
    %197 = arith.mulf %193, %153 : vector<2x32xf32>
    %198 = arith.addf %196, %197 : vector<2x32xf32>
    %199 = vector.extract_strided_slice %177 {offsets = [0, 128], sizes = [2, 128], strides = [1, 1]} : vector<2x256xf32> to vector<2x128xf32>
    %200 = vector.extract_strided_slice %199 {offsets = [0, 0], sizes = [2, 64], strides = [1, 1]} : vector<2x128xf32> to vector<2x64xf32>
    %201 = arith.negf %200 : vector<2x64xf32>
    %202 = math.exp %201 : vector<2x64xf32>
    %cst_30 = arith.constant 1.000000e+00 : f32
    %203 = vector.broadcast %cst_30 : f32 to vector<2x64xf32>
    %204 = arith.addf %203, %202 : vector<2x64xf32>
    %205 = arith.divf %203, %204 : vector<2x64xf32>
    %206 = vector.extract_strided_slice %199 {offsets = [0, 64], sizes = [2, 32], strides = [1, 1]} : vector<2x128xf32> to vector<2x32xf32>
    %207 = vector.extract_strided_slice %205 {offsets = [0, 0], sizes = [2, 32], strides = [1, 1]} : vector<2x64xf32> to vector<2x32xf32>
    %208 = vector.extract_strided_slice %199 {offsets = [0, 96], sizes = [2, 32], strides = [1, 1]} : vector<2x128xf32> to vector<2x32xf32>
    %209 = arith.mulf %207, %208 : vector<2x32xf32>
    %210 = arith.addf %206, %209 : vector<2x32xf32>
    %211 = math.tanh %210 : vector<2x32xf32>
    %212 = vector.extract_strided_slice %205 {offsets = [0, 32], sizes = [2, 32], strides = [1, 1]} : vector<2x64xf32> to vector<2x32xf32>
    %cst_31 = arith.constant 1.000000e+00 : f32
    %213 = vector.broadcast %cst_31 : f32 to vector<2x32xf32>
    %214 = arith.subf %213, %212 : vector<2x32xf32>
    %215 = arith.mulf %214, %211 : vector<2x32xf32>
    %216 = arith.mulf %212, %172 : vector<2x32xf32>
    %217 = arith.addf %215, %216 : vector<2x32xf32>
    %218 = tpu.concatenate %198, %217 in 1 : vector<2x32xf32>, vector<2x32xf32> -> vector<2x64xf32>
    %219 = arith.truncf %218 : vector<2x64xf32> to vector<2x64xbf16>
    %cst_32 = arith.constant dense<0.000000e+00> : vector<2x256xf32>
    %220 = tpu.matmul %219, %1, %cst_32 {dimension_numbers = #tpu.dot_dimension_numbers<[1], [0], [0], [1], [0, 0, 1, 1], [], []>} : vector<2x64xbf16>, vector<64x256xbf16>, vector<2x256xf32> -> vector<2x256xf32>
    %221 = vector.broadcast %2 : vector<1x256xf32> to vector<2x256xf32>
    %222 = arith.addf %220, %221 : vector<2x256xf32>
    %223 = vector.extract_strided_slice %12 {offsets = [10, 0], sizes = [2, 128], strides = [1, 1]} : vector<16x128xf32> to vector<2x128xf32>
    %224 = vector.extract_strided_slice %223 {offsets = [0, 0], sizes = [2, 64], strides = [1, 1]} : vector<2x128xf32> to vector<2x64xf32>
    %225 = vector.extract_strided_slice %222 {offsets = [0, 0], sizes = [2, 64], strides = [1, 1]} : vector<2x256xf32> to vector<2x64xf32>
    %226 = arith.addf %224, %225 : vector<2x64xf32>
    %227 = arith.negf %226 : vector<2x64xf32>
    %228 = math.exp %227 : vector<2x64xf32>
    %cst_33 = arith.constant 1.000000e+00 : f32
    %229 = vector.broadcast %cst_33 : f32 to vector<2x64xf32>
    %230 = arith.addf %229, %228 : vector<2x64xf32>
    %231 = arith.divf %229, %230 : vector<2x64xf32>
    %232 = vector.extract_strided_slice %223 {offsets = [0, 64], sizes = [2, 32], strides = [1, 1]} : vector<2x128xf32> to vector<2x32xf32>
    %233 = vector.extract_strided_slice %231 {offsets = [0, 0], sizes = [2, 32], strides = [1, 1]} : vector<2x64xf32> to vector<2x32xf32>
    %234 = vector.extract_strided_slice %222 {offsets = [0, 64], sizes = [2, 32], strides = [1, 1]} : vector<2x256xf32> to vector<2x32xf32>
    %235 = arith.mulf %233, %234 : vector<2x32xf32>
    %236 = arith.addf %232, %235 : vector<2x32xf32>
    %237 = math.tanh %236 : vector<2x32xf32>
    %238 = vector.extract_strided_slice %231 {offsets = [0, 32], sizes = [2, 32], strides = [1, 1]} : vector<2x64xf32> to vector<2x32xf32>
    %cst_34 = arith.constant 1.000000e+00 : f32
    %239 = vector.broadcast %cst_34 : f32 to vector<2x32xf32>
    %240 = arith.subf %239, %238 : vector<2x32xf32>
    %241 = arith.mulf %240, %237 : vector<2x32xf32>
    %242 = arith.mulf %238, %198 : vector<2x32xf32>
    %243 = arith.addf %241, %242 : vector<2x32xf32>
    %244 = vector.extract_strided_slice %222 {offsets = [0, 128], sizes = [2, 128], strides = [1, 1]} : vector<2x256xf32> to vector<2x128xf32>
    %245 = vector.extract_strided_slice %244 {offsets = [0, 0], sizes = [2, 64], strides = [1, 1]} : vector<2x128xf32> to vector<2x64xf32>
    %246 = arith.negf %245 : vector<2x64xf32>
    %247 = math.exp %246 : vector<2x64xf32>
    %cst_35 = arith.constant 1.000000e+00 : f32
    %248 = vector.broadcast %cst_35 : f32 to vector<2x64xf32>
    %249 = arith.addf %248, %247 : vector<2x64xf32>
    %250 = arith.divf %248, %249 : vector<2x64xf32>
    %251 = vector.extract_strided_slice %244 {offsets = [0, 64], sizes = [2, 32], strides = [1, 1]} : vector<2x128xf32> to vector<2x32xf32>
    %252 = vector.extract_strided_slice %250 {offsets = [0, 0], sizes = [2, 32], strides = [1, 1]} : vector<2x64xf32> to vector<2x32xf32>
    %253 = vector.extract_strided_slice %244 {offsets = [0, 96], sizes = [2, 32], strides = [1, 1]} : vector<2x128xf32> to vector<2x32xf32>
    %254 = arith.mulf %252, %253 : vector<2x32xf32>
    %255 = arith.addf %251, %254 : vector<2x32xf32>
    %256 = math.tanh %255 : vector<2x32xf32>
    %257 = vector.extract_strided_slice %250 {offsets = [0, 32], sizes = [2, 32], strides = [1, 1]} : vector<2x64xf32> to vector<2x32xf32>
    %cst_36 = arith.constant 1.000000e+00 : f32
    %258 = vector.broadcast %cst_36 : f32 to vector<2x32xf32>
    %259 = arith.subf %258, %257 : vector<2x32xf32>
    %260 = arith.mulf %259, %256 : vector<2x32xf32>
    %261 = arith.mulf %257, %217 : vector<2x32xf32>
    %262 = arith.addf %260, %261 : vector<2x32xf32>
    %263 = tpu.concatenate %243, %262 in 1 : vector<2x32xf32>, vector<2x32xf32> -> vector<2x64xf32>
    %264 = arith.truncf %263 : vector<2x64xf32> to vector<2x64xbf16>
    %cst_37 = arith.constant dense<0.000000e+00> : vector<2x256xf32>
    %265 = tpu.matmul %264, %1, %cst_37 {dimension_numbers = #tpu.dot_dimension_numbers<[1], [0], [0], [1], [0, 0, 1, 1], [], []>} : vector<2x64xbf16>, vector<64x256xbf16>, vector<2x256xf32> -> vector<2x256xf32>
    %266 = vector.broadcast %2 : vector<1x256xf32> to vector<2x256xf32>
    %267 = arith.addf %265, %266 : vector<2x256xf32>
    %268 = vector.extract_strided_slice %12 {offsets = [12, 0], sizes = [2, 128], strides = [1, 1]} : vector<16x128xf32> to vector<2x128xf32>
    %269 = vector.extract_strided_slice %268 {offsets = [0, 0], sizes = [2, 64], strides = [1, 1]} : vector<2x128xf32> to vector<2x64xf32>
    %270 = vector.extract_strided_slice %267 {offsets = [0, 0], sizes = [2, 64], strides = [1, 1]} : vector<2x256xf32> to vector<2x64xf32>
    %271 = arith.addf %269, %270 : vector<2x64xf32>
    %272 = arith.negf %271 : vector<2x64xf32>
    %273 = math.exp %272 : vector<2x64xf32>
    %cst_38 = arith.constant 1.000000e+00 : f32
    %274 = vector.broadcast %cst_38 : f32 to vector<2x64xf32>
    %275 = arith.addf %274, %273 : vector<2x64xf32>
    %276 = arith.divf %274, %275 : vector<2x64xf32>
    %277 = vector.extract_strided_slice %268 {offsets = [0, 64], sizes = [2, 32], strides = [1, 1]} : vector<2x128xf32> to vector<2x32xf32>
    %278 = vector.extract_strided_slice %276 {offsets = [0, 0], sizes = [2, 32], strides = [1, 1]} : vector<2x64xf32> to vector<2x32xf32>
    %279 = vector.extract_strided_slice %267 {offsets = [0, 64], sizes = [2, 32], strides = [1, 1]} : vector<2x256xf32> to vector<2x32xf32>
    %280 = arith.mulf %278, %279 : vector<2x32xf32>
    %281 = arith.addf %277, %280 : vector<2x32xf32>
    %282 = math.tanh %281 : vector<2x32xf32>
    %283 = vector.extract_strided_slice %276 {offsets = [0, 32], sizes = [2, 32], strides = [1, 1]} : vector<2x64xf32> to vector<2x32xf32>
    %cst_39 = arith.constant 1.000000e+00 : f32
    %284 = vector.broadcast %cst_39 : f32 to vector<2x32xf32>
    %285 = arith.subf %284, %283 : vector<2x32xf32>
    %286 = arith.mulf %285, %282 : vector<2x32xf32>
    %287 = arith.mulf %283, %243 : vector<2x32xf32>
    %288 = arith.addf %286, %287 : vector<2x32xf32>
    %289 = vector.extract_strided_slice %267 {offsets = [0, 128], sizes = [2, 128], strides = [1, 1]} : vector<2x256xf32> to vector<2x128xf32>
    %290 = vector.extract_strided_slice %289 {offsets = [0, 0], sizes = [2, 64], strides = [1, 1]} : vector<2x128xf32> to vector<2x64xf32>
    %291 = arith.negf %290 : vector<2x64xf32>
    %292 = math.exp %291 : vector<2x64xf32>
    %cst_40 = arith.constant 1.000000e+00 : f32
    %293 = vector.broadcast %cst_40 : f32 to vector<2x64xf32>
    %294 = arith.addf %293, %292 : vector<2x64xf32>
    %295 = arith.divf %293, %294 : vector<2x64xf32>
    %296 = vector.extract_strided_slice %289 {offsets = [0, 64], sizes = [2, 32], strides = [1, 1]} : vector<2x128xf32> to vector<2x32xf32>
    %297 = vector.extract_strided_slice %295 {offsets = [0, 0], sizes = [2, 32], strides = [1, 1]} : vector<2x64xf32> to vector<2x32xf32>
    %298 = vector.extract_strided_slice %289 {offsets = [0, 96], sizes = [2, 32], strides = [1, 1]} : vector<2x128xf32> to vector<2x32xf32>
    %299 = arith.mulf %297, %298 : vector<2x32xf32>
    %300 = arith.addf %296, %299 : vector<2x32xf32>
    %301 = math.tanh %300 : vector<2x32xf32>
    %302 = vector.extract_strided_slice %295 {offsets = [0, 32], sizes = [2, 32], strides = [1, 1]} : vector<2x64xf32> to vector<2x32xf32>
    %cst_41 = arith.constant 1.000000e+00 : f32
    %303 = vector.broadcast %cst_41 : f32 to vector<2x32xf32>
    %304 = arith.subf %303, %302 : vector<2x32xf32>
    %305 = arith.mulf %304, %301 : vector<2x32xf32>
    %306 = arith.mulf %302, %262 : vector<2x32xf32>
    %307 = arith.addf %305, %306 : vector<2x32xf32>
    %308 = tpu.concatenate %288, %307 in 1 : vector<2x32xf32>, vector<2x32xf32> -> vector<2x64xf32>
    %309 = arith.truncf %308 : vector<2x64xf32> to vector<2x64xbf16>
    %cst_42 = arith.constant dense<0.000000e+00> : vector<2x256xf32>
    %310 = tpu.matmul %309, %1, %cst_42 {dimension_numbers = #tpu.dot_dimension_numbers<[1], [0], [0], [1], [0, 0, 1, 1], [], []>} : vector<2x64xbf16>, vector<64x256xbf16>, vector<2x256xf32> -> vector<2x256xf32>
    %311 = vector.broadcast %2 : vector<1x256xf32> to vector<2x256xf32>
    %312 = arith.addf %310, %311 : vector<2x256xf32>
    %313 = vector.extract_strided_slice %12 {offsets = [14, 0], sizes = [2, 128], strides = [1, 1]} : vector<16x128xf32> to vector<2x128xf32>
    %314 = vector.extract_strided_slice %313 {offsets = [0, 0], sizes = [2, 64], strides = [1, 1]} : vector<2x128xf32> to vector<2x64xf32>
    %315 = vector.extract_strided_slice %312 {offsets = [0, 0], sizes = [2, 64], strides = [1, 1]} : vector<2x256xf32> to vector<2x64xf32>
    %316 = arith.addf %314, %315 : vector<2x64xf32>
    %317 = arith.negf %316 : vector<2x64xf32>
    %318 = math.exp %317 : vector<2x64xf32>
    %cst_43 = arith.constant 1.000000e+00 : f32
    %319 = vector.broadcast %cst_43 : f32 to vector<2x64xf32>
    %320 = arith.addf %319, %318 : vector<2x64xf32>
    %321 = arith.divf %319, %320 : vector<2x64xf32>
    %322 = vector.extract_strided_slice %313 {offsets = [0, 64], sizes = [2, 32], strides = [1, 1]} : vector<2x128xf32> to vector<2x32xf32>
    %323 = vector.extract_strided_slice %321 {offsets = [0, 0], sizes = [2, 32], strides = [1, 1]} : vector<2x64xf32> to vector<2x32xf32>
    %324 = vector.extract_strided_slice %312 {offsets = [0, 64], sizes = [2, 32], strides = [1, 1]} : vector<2x256xf32> to vector<2x32xf32>
    %325 = arith.mulf %323, %324 : vector<2x32xf32>
    %326 = arith.addf %322, %325 : vector<2x32xf32>
    %327 = math.tanh %326 : vector<2x32xf32>
    %328 = vector.extract_strided_slice %321 {offsets = [0, 32], sizes = [2, 32], strides = [1, 1]} : vector<2x64xf32> to vector<2x32xf32>
    %cst_44 = arith.constant 1.000000e+00 : f32
    %329 = vector.broadcast %cst_44 : f32 to vector<2x32xf32>
    %330 = arith.subf %329, %328 : vector<2x32xf32>
    %331 = arith.mulf %330, %327 : vector<2x32xf32>
    %332 = arith.mulf %328, %288 : vector<2x32xf32>
    %333 = arith.addf %331, %332 : vector<2x32xf32>
    %334 = vector.extract_strided_slice %312 {offsets = [0, 128], sizes = [2, 128], strides = [1, 1]} : vector<2x256xf32> to vector<2x128xf32>
    %335 = vector.extract_strided_slice %334 {offsets = [0, 0], sizes = [2, 64], strides = [1, 1]} : vector<2x128xf32> to vector<2x64xf32>
    %336 = arith.negf %335 : vector<2x64xf32>
    %337 = math.exp %336 : vector<2x64xf32>
    %cst_45 = arith.constant 1.000000e+00 : f32
    %338 = vector.broadcast %cst_45 : f32 to vector<2x64xf32>
    %339 = arith.addf %338, %337 : vector<2x64xf32>
    %340 = arith.divf %338, %339 : vector<2x64xf32>
    %341 = vector.extract_strided_slice %334 {offsets = [0, 64], sizes = [2, 32], strides = [1, 1]} : vector<2x128xf32> to vector<2x32xf32>
    %342 = vector.extract_strided_slice %340 {offsets = [0, 0], sizes = [2, 32], strides = [1, 1]} : vector<2x64xf32> to vector<2x32xf32>
    %343 = vector.extract_strided_slice %334 {offsets = [0, 96], sizes = [2, 32], strides = [1, 1]} : vector<2x128xf32> to vector<2x32xf32>
    %344 = arith.mulf %342, %343 : vector<2x32xf32>
    %345 = arith.addf %341, %344 : vector<2x32xf32>
    %346 = math.tanh %345 : vector<2x32xf32>
    %347 = vector.extract_strided_slice %340 {offsets = [0, 32], sizes = [2, 32], strides = [1, 1]} : vector<2x64xf32> to vector<2x32xf32>
    %cst_46 = arith.constant 1.000000e+00 : f32
    %348 = vector.broadcast %cst_46 : f32 to vector<2x32xf32>
    %349 = arith.subf %348, %347 : vector<2x32xf32>
    %350 = arith.mulf %349, %346 : vector<2x32xf32>
    %351 = arith.mulf %347, %307 : vector<2x32xf32>
    %352 = arith.addf %350, %351 : vector<2x32xf32>
    %353 = tpu.concatenate %333, %352 in 1 : vector<2x32xf32>, vector<2x32xf32> -> vector<2x64xf32>
    %354 = arith.truncf %353 : vector<2x64xf32> to vector<2x64xbf16>
    %cst_47 = arith.constant dense<0.000000e+00> : vector<2x256xf32>
    %355 = tpu.matmul %354, %1, %cst_47 {dimension_numbers = #tpu.dot_dimension_numbers<[1], [0], [0], [1], [0, 0, 1, 1], [], []>} : vector<2x64xbf16>, vector<64x256xbf16>, vector<2x256xf32> -> vector<2x256xf32>
    %356 = vector.broadcast %2 : vector<1x256xf32> to vector<2x256xf32>
    %357 = arith.addf %355, %356 : vector<2x256xf32>
    %358 = vector.extract_strided_slice %357 {offsets = [0, 128], sizes = [2, 128], strides = [1, 1]} : vector<2x256xf32> to vector<2x128xf32>
    %359 = vector.extract_strided_slice %358 {offsets = [0, 0], sizes = [2, 64], strides = [1, 1]} : vector<2x128xf32> to vector<2x64xf32>
    %360 = arith.negf %359 : vector<2x64xf32>
    %361 = math.exp %360 : vector<2x64xf32>
    %cst_48 = arith.constant 1.000000e+00 : f32
    %362 = vector.broadcast %cst_48 : f32 to vector<2x64xf32>
    %363 = arith.addf %362, %361 : vector<2x64xf32>
    %364 = arith.divf %362, %363 : vector<2x64xf32>
    %365 = vector.extract_strided_slice %358 {offsets = [0, 64], sizes = [2, 32], strides = [1, 1]} : vector<2x128xf32> to vector<2x32xf32>
    %366 = vector.extract_strided_slice %364 {offsets = [0, 0], sizes = [2, 32], strides = [1, 1]} : vector<2x64xf32> to vector<2x32xf32>
    %367 = vector.extract_strided_slice %358 {offsets = [0, 96], sizes = [2, 32], strides = [1, 1]} : vector<2x128xf32> to vector<2x32xf32>
    %368 = arith.mulf %366, %367 : vector<2x32xf32>
    %369 = arith.addf %365, %368 : vector<2x32xf32>
    %370 = math.tanh %369 : vector<2x32xf32>
    %371 = vector.extract_strided_slice %364 {offsets = [0, 32], sizes = [2, 32], strides = [1, 1]} : vector<2x64xf32> to vector<2x32xf32>
    %cst_49 = arith.constant 1.000000e+00 : f32
    %372 = vector.broadcast %cst_49 : f32 to vector<2x32xf32>
    %373 = arith.subf %372, %371 : vector<2x32xf32>
    %374 = arith.mulf %373, %370 : vector<2x32xf32>
    %375 = arith.mulf %371, %352 : vector<2x32xf32>
    %376 = arith.addf %374, %375 : vector<2x32xf32>
    %377 = vector.broadcast %4 : vector<1x32xf32> to vector<2x32xf32>
    %378 = arith.mulf %376, %377 : vector<2x32xf32>
    %cst_50 = arith.constant dense<0.000000e+00> : vector<2xf32>
    %379 = vector.multi_reduction <add>, %378, %cst_50 [1] : vector<2x32xf32> to vector<2xf32>
    %380 = vector.shape_cast %379 : vector<2xf32> to vector<2x1xf32>
    %381 = vector.broadcast %5 : vector<1x1xf32> to vector<2x1xf32>
    %382 = arith.addf %380, %381 : vector<2x1xf32>
    %383 = arith.negf %382 : vector<2x1xf32>
    %384 = math.exp %383 : vector<2x1xf32>
    %cst_51 = arith.constant 1.000000e+00 : f32
    %385 = vector.broadcast %cst_51 : f32 to vector<2x1xf32>
    %386 = arith.addf %385, %384 : vector<2x1xf32>
    %387 = arith.divf %385, %386 : vector<2x1xf32>
    %c0_52 = arith.constant 0 : index
    %c0_53 = arith.constant 0 : index
    %388 = vector.load %arg2[%c0_52, %c0_53] : memref<2x1xf32, #tpu.memory_space<vmem>>, vector<2x1xf32>
    tpu.vector_store %arg2[%c0_52, %c0_53], %387 {strides = array<i32>} : memref<2x1xf32, #tpu.memory_space<vmem>>, vector<2x1xf32>,
    return
  }
}

</mosaic_0001>

<bundles_post_ra>
// kernel: gru_anomaly_detector_forward.1
= control target key start
LH: loop header
LB: loop body
LE: loop exit
PB: predicated region body
PF: predicated region fallthrough
CT: control target
= control target key end

     0   :  { %7 = vsyncpa [#allocation3], 0  ;;  %s1176_s9 = smov [#allocation2]   ;;  %s1456_s0 = inlined_call_operand.vmem [shape: f32[16,16], index: 0, kind: input, shape index: {}]   ;;  %s1457_s1 = inlined_call_operand.hbm [shape: f32[88,256], index: 1, kind: input, shape index: {}]   ;;  %s1458_s2 = inlined_call_operand.vmem [shape: f32[2,1], index: 2, kind: output, shape index: {}]  }
   0x1   :  { %s15_s10 = sshll.u32 %s1176_s9, 4  ;;  %s16_s10 = int_to_ptr.vmem [resolvable:$true] %s15_s10 }
   0x2   :  { %s1162_s11 = scalar_lea.vmem %s16_s10, 2816  ;;  %p1167_p1 = scmp.lt.s32.totalorder %s16_s10, %s16_s10 }
   0x3   :  { %p1163_p0 = scmp.ne.s32.totalorder %s16_s10, %s1162_s11  ;;  %p1168_p2 = scmp.lt.s32.totalorder %s1162_s11, %s1162_s11 }
   0x5   :  { %p1169_p3 = por %p1168_p2, %p1167_p1 }
   0x7   :  { %p1170_p4 = pnand %p1169_p3, %p1163_p0 }
   0x9   :  { %1173 = shalt.err (!%p1170_p4)
}
   0xa   :  { %s1177_s12 = smov 256   ;;  %s1178_s13 = smov 16  }
   0xb   :  { %21 = dma.hbm_to_vmem [thread:$0]  %s1457_s1, 2816, %s16_s10, [#allocation3], %s1177_s12, %s1177_s12, %s1178_s13  }
   0xc   :  { %1174 = dma.done.wait [#allocation3], 2816  }
   0xd   :  { %1175 = vsyncadd [#allocation3], 4294964480  ;;  %v106_v0 = vlaneseq  ;;  %v1179_v1 = vmov 0.0   ;;  %vm1180_vm0 = vmmov 0   ;;  %v54_v4 = vld [vmem:[#allocation2 + $0x90] sm:$0xff]  ;;  %v55_v5 = vld [vmem:[#allocation2 + $0xa0] sm:$0xff] }
   0xe   :  { %1039 = vmatprep.subr.bf16.mxu0 %v1179_v1  ;;  %1041 = vmatprep.mubr.msk.bf16.mxu0 %vm1180_vm0, %v1179_v1  ;;  %v57_v6 = vld [vmem:[%s1456_s0] sm:$0xff]  ;;  %v56_v7 = vpack.c.bf16 %v55_v5, %v54_v4  ;;  %v58_v8 = vld [vmem:[%s1456_s0 + $0x8] sm:$0xff]  ;;  %vm60_vm1 = vcmask 130048   ;;  %s1181_s19 = smov 64   ;;  %v41_v29 = vld [vmem:[#allocation2 + $0x78] sm:$0xff]  ;;  %s1182_s0 = smov 96  }
   0xf   :  { %v1203_v2 = vshrl.u32 %v106_v0, 7  ;;  %v1212_v9 = vld [vmem:[#allocation2 + $0x80] ss:$8 sm:$0x3]  ;;  %v59_v10 = vpack.c.bf16 %v58_v8, %v57_v6  ;;  %v52_v12 = vld [vmem:[#allocation2 + $0x81] ss:$0 sm:$0xff] }
  0x10   :  { %1040 = vmatpush3.bf16.msra.mxu0 %v56_v7  ;;  %v39_v28 = vld [vmem:[#allocation2 + $0x68] sm:$0xff]  ;;  %v38_v30 = vld [vmem:[#allocation2 + $0x60] sm:$0xff]  ;;  %v40_v32 = vld [vmem:[#allocation2 + $0x70] sm:$0xff]  ;;  %v1183_v53 = vmov 0   ;;  %vm140_vm2 = vcmask 261120   ;;  %vm148_vm3 = vcmask 523264  }
  0x11   :  { %v108_v3 = vsub.s32 0, %v1203_v2  ;;  %v1227_v31 = vpack.c.bf16 %v41_v29, %v39_v28  ;;  %v35_v33 = vld [vmem:[#allocation2 + $0x48] sm:$0xff]  ;;  %v37_v34 = vld [vmem:[#allocation2 + $0x58] sm:$0xff]  ;;  %v1229_v35 = vpack.c.bf16 %v40_v32, %v38_v30  ;;  %v34_v37 = vld [vmem:[#allocation2 + $0x40] sm:$0xff]  ;;  %184 = vmatprep.mubr.bf16.mxu1 %v1183_v53  ;;  %v145_v62 = vsub.s32 1, %v1203_v2  ;;  %s1184_s20 = smov 32  }
  0x12   :  { %v1231_v36 = vpack.c.bf16 %v37_v34, %v35_v33  ;;  %v36_v38 = vld [vmem:[#allocation2 + $0x50] sm:$0xff]  ;;  %v31_v39 = vld [vmem:[#allocation2 + $0x28] sm:$0xff]  ;;  %v33_v40 = vld [vmem:[#allocation2 + $0x38] sm:$0xff]  ;;  %vm989_vm4 = vcmask 254976   ;;  %vm1004_vm5 = vcmask 1024  }
  0x13   :  { %v1215_v11 = vrot.slane %v1212_v9, %v108_v3  ;;  %1042 = vmatmul.mubr.msk.bf16.vlgmr.msra.gmra.mxu0 %vm60_vm1, %v59_v10  ;;  %160 = vmatprep.subr.bf16.mxu1 %v1227_v31  ;;  %v1236_v41 = vpack.c.bf16 %v36_v38, %v34_v37  ;;  %v1240_v42 = vpack.c.bf16 %v33_v40, %v31_v39  ;;  %v30_v43 = vld [vmem:[#allocation2 + $0x20] sm:$0xff]  ;;  %v32_v44 = vld [vmem:[#allocation2 + $0x30] sm:$0xff]  ;;  %v27_v47 = vld [vmem:[#allocation2 + $0x8] sm:$0xff] }
  0x14   :  { %270 = vmatprep.subr.bf16.mxu0 %v1227_v31  ;;  %161 = vmatpush1.bf16.msra.mxu1 %v1229_v35  ;;  %v1244_v46 = vpack.c.bf16 %v32_v44, %v30_v43  ;;  %v29_v48 = vld [vmem:[#allocation2 + $0x18] sm:$0xff]  ;;  %v26_v50 = vld [vmem:[#allocation2] sm:$0xff]  ;;  %v28_v51 = vld [vmem:[#allocation2 + $0x10] sm:$0xff]  ;;  %v1278_v63 = vrot.slane %v1212_v9, %v145_v62 }
  0x15   :  { %118 = vrot.lane.b32.xlu0 %v1215_v11, %s1181_s19  ;;  %271 = vmatpush1.bf16.msra.mxu0 %v1229_v35  ;;  %v1252_v49 = vpack.c.bf16 %v29_v48, %v27_v47  ;;  %v1254_v52 = vpack.c.bf16 %v28_v51, %v26_v50 }
  0x16   :  { %162 = vmatprep.subr.bf16.mxu1 %v1231_v36  ;;  %272 = vmatprep.subr.bf16.mxu0 %v1231_v36 }
  0x17   :  { %294 = vmatprep.mubr.bf16.mxu0 %v1183_v53 }
  0x18   :  { %163 = vmatpush1.bf16.msra.mxu1 %v1236_v41 }
  0x19   :  { %273 = vmatpush1.bf16.msra.mxu0 %v1236_v41  ;;  %164 = vmatprep.subr.bf16.mxu1 %v1240_v42 }
  0x1a   :  { %274 = vmatprep.subr.bf16.mxu0 %v1240_v42 }
  0x1c   :  { %165 = vmatpush1.bf16.msra.mxu1 %v1244_v46 }
  0x1d   :  { %275 = vmatpush1.bf16.msra.mxu0 %v1244_v46  ;;  %166 = vmatprep.subr.bf16.mxu1 %v1252_v49 }
  0x1e   :  { %276 = vmatprep.subr.bf16.mxu0 %v1252_v49 }
  0x20   :  { %167 = vmatpush1.bf16.msra.mxu1 %v1254_v52 }
  0x21   :  { %277 = vmatpush1.bf16.msra.mxu0 %v1254_v52  ;;  %380 = vmatprep.subr.bf16.mxu1 %v1227_v31 }
  0x22   :  { %490 = vmatprep.subr.bf16.mxu0 %v1227_v31 }
  0x87   :  { %v119_v23 = vpop.permute.xlu0 %118 }
  0xd3   :  { %v98_v13 = vpop.f32.mrf.mxu0 }
  0xd4   :  { %v1219_v14 = vadd.f32 %v98_v13, %v52_v12 }
  0xd5   :  { %v1043_v15 = vpop.f32.mrf.mxu0 }
  0xd6   :  { %v111_v16 = vadd.f32 %v1215_v11, %v1219_v14 }
  0xd7   :  { %v101_v17 = vpop.f32.mrf.mxu0 }
  0xd8   :  { %v1012_v18 = vmul.f32 -1.442695, %v111_v16  ;;  %v1223_v19 = vadd.f32 %v101_v17, %v52_v12 }
  0xd9   :  { %v1044_v20 = vpop.f32.mrf.mxu0 }
  0xda   :  { %1054 = vpow2.f32 %v1012_v18 }
  0xe7   :  { %v1055_v21 = vpop.eup %1054 }
  0xe8   :  { %v115_v22 = vadd.f32 1.0, %v1055_v21 }
  0xea   :  { %1056 = vrcp.f32 %v115_v22 }
  0xf7   :  { %v1057_v24 = vpop.eup %1056 }
  0xf8   :  { %v121_v25 = vmul.f32 %v1057_v24, %v119_v23  ;;  %v128_v54 = vsub.f32 1.0, %v1057_v24  ;;  %v134_v56 = vmul.f32 0.0, %v1057_v24 }
  0xfa   :  { %123 = vrot.lane.b32.xlu0 %v121_v25, %s1181_s19 }
 0x16c   :  { %v124_v26 = vpop.permute.xlu0 %123 }
 0x16d   :  { %v126_v27 = vadd.f32 %v124_v26, %v1219_v14 }
 0x16f   :  { %1058 = vtanh.f32 %v126_v27 }
 0x17c   :  { %v1059_v45 = vpop.eup %1058 }
 0x17d   :  { %130 = vrot.lane.b32.xlu1 %v1059_v45, %s1182_s0 }
 0x1ef   :  { %v131_v55 = vpop.permute.xlu1 %130 }
 0x1f0   :  { %v133_v57 = vmul.f32 %v131_v55, %v128_v54 }
 0x1f2   :  { %v135_v58 = vadd.f32 %v134_v56, %v133_v57 }
 0x1f4   :  { %137 = vrot.lane.b32.xlu1 %v135_v58, %s1182_s0  ;;  %v219_v29 = vrot.slane %v135_v58, 6 }
 0x266   :  { %v138_v59 = vpop.permute.xlu1 %137 }
 0x267   :  { %v141_v60 = vsel %vm140_vm2, %v138_v59, 0.0 }
 0x268   :  { %v142_v61 = vpack.c.bf16 %v141_v60, %v141_v60 }
 0x26a   :  { %1013 = vmatmul.mubr.msk.bf16.vlgmr.msra.gmra.mxu1 %vm148_vm3, %v142_v61 }
 0x26b   :  { %381 = vmatpush1.bf16.msra.mxu1 %v1229_v35  ;;  %404 = vmatprep.mubr.bf16.mxu1 %v1183_v53 }
 0x26c   :  { %382 = vmatprep.subr.bf16.mxu1 %v1231_v36 }
 0x26f   :  { %383 = vmatpush1.bf16.msra.mxu1 %v1236_v41 }
 0x270   :  { %384 = vmatprep.subr.bf16.mxu1 %v1240_v42 }
 0x273   :  { %385 = vmatpush1.bf16.msra.mxu1 %v1244_v46 }
 0x274   :  { %386 = vmatprep.subr.bf16.mxu1 %v1252_v49 }
 0x277   :  { %387 = vmatpush1.bf16.msra.mxu1 %v1254_v52 }
 0x278   :  { %593 = vmatprep.subr.bf16.mxu1 %v1227_v31 }
 0x32a   :  { %v186_v0 = vpop.f32.mrf.mxu1 }
 0x32b   :  { %v187_v1 = vadd.f32 %v186_v0, %v1215_v11 }
 0x32c   :  { %v188_v3 = vpop.f32.mrf.mxu1 }
 0x32d   :  { %v194_v4 = vrot.slane %v187_v1, 6  ;;  %v189_v5 = vadd.f32 %v188_v3, %v1278_v63 }
 0x32e   :  { %v190_v6 = vpop.f32.mrf.mxu1 }
 0x32f   :  { %230 = vrot.lane.b32.xlu1 %v189_v5, %s1184_s20  ;;  %203 = vrot.lane.b32.xlu0 %v194_v4, %s1181_s19  ;;  %v196_v8 = vadd.f32 %v194_v4, %v1219_v14  ;;  %v1015_v2 = vmul.f32 -1.442695, %v189_v5 }
 0x330   :  { %v191_v7 = vpop.f32.mrf.mxu1 }
 0x331   :  { %v1014_v10 = vmul.f32 -1.442695, %v196_v8  ;;  %1060 = vpow2.f32 %v1015_v2 }
 0x333   :  { %1062 = vpow2.f32 %v1014_v10 }
 0x33e   :  { %v1061_v9 = vpop.eup %1060 }
 0x33f   :  { %v226_v13 = vadd.f32 1.0, %v1061_v9 }
 0x340   :  { %v1063_v12 = vpop.eup %1062 }
 0x341   :  { %v200_v15 = vadd.f32 1.0, %v1063_v12  ;;  %1064 = vrcp.f32 %v226_v13 }
 0x343   :  { %1066 = vrcp.f32 %v200_v15 }
 0x34e   :  { %v1065_v16 = vpop.eup %1064 }
 0x34f   :  { %v240_v39 = vsub.f32 1.0, %v1065_v16  ;;  %v246_v43 = vmul.f32 0.0, %v1065_v16 }
 0x350   :  { %v1067_v17 = vpop.eup %1066 }
 0x351   :  { %v213_v30 = vsub.f32 1.0, %v1067_v17  ;;  %v221_v33 = vmul.f32 %v1067_v17, %v219_v29 }
 0x3a1   :  { %v231_v18 = vpop.permute.xlu1 %230  ;;  %v204_v20 = vpop.permute.xlu0 %203 }
 0x3a2   :  { %v233_v21 = vmul.f32 %v1065_v16, %v231_v18  ;;  %v206_v22 = vmul.f32 %v1067_v17, %v204_v20 }
 0x3a4   :  { %235 = vrot.lane.b32.xlu1 %v233_v21, %s1181_s19  ;;  %208 = vrot.lane.b32.xlu0 %v206_v22, %s1181_s19 }
 0x416   :  { %v236_v23 = vpop.permute.xlu1 %235  ;;  %v209_v24 = vpop.permute.xlu0 %208 }
 0x417   :  { %v238_v25 = vadd.f32 %v236_v23, %v189_v5  ;;  %v211_v26 = vadd.f32 %v209_v24, %v1219_v14 }
 0x419   :  { %1068 = vtanh.f32 %v238_v25 }
 0x41a   :  { %1070 = vtanh.f32 %v211_v26 }
 0x426   :  { %v1069_v27 = vpop.eup %1068 }
 0x427   :  { %v1071_v28 = vpop.eup %1070  ;;  %242 = vrot.lane.b32.xlu1 %v1069_v27, %s1182_s0 }
 0x428   :  { %215 = vrot.lane.b32.xlu0 %v1071_v28, %s1182_s0 }
 0x499   :  { %v243_v38 = vpop.permute.xlu1 %242 }
 0x49a   :  { %v216_v32 = vpop.permute.xlu0 %215  ;;  %v245_v40 = vmul.f32 %v243_v38, %v240_v39 }
 0x49b   :  { %v218_v34 = vmul.f32 %v216_v32, %v213_v30 }
 0x49c   :  { %v1294_v44 = vadd.f32 %v246_v43, %v245_v40 }
 0x49d   :  { %v1290_v37 = vadd.f32 %v221_v33, %v218_v34 }
 0x49e   :  { %v253_v45 = vrot.slane %v1294_v44, 6 }
 0x49f   :  { %249 = vrot.lane.b32.xlu0 %v1290_v37, %s1182_s0  ;;  %v329_v20 = vrot.slane %v1290_v37, 6 }
 0x511   :  { %v250_v47 = vpop.permute.xlu0 %249 }
 0x512   :  { %v255_v48 = vsel %vm140_vm2, %v250_v47, %v253_v45 }
 0x513   :  { %v256_v50 = vpack.c.bf16 %v255_v48, %v255_v48 }
 0x515   :  { %v258_v51 = vrot.slane %v256_v50, 1 }
 0x517   :  { %1016 = vmatmul.mubr.msk.bf16.vlgmr.msra.gmra.mxu0 %vm148_vm3, %v258_v51 }
 0x518   :  { %491 = vmatpush1.bf16.msra.mxu0 %v1229_v35  ;;  %514 = vmatprep.mubr.bf16.mxu0 %v1183_v53 }
 0x519   :  { %492 = vmatprep.subr.bf16.mxu0 %v1231_v36 }
 0x51c   :  { %493 = vmatpush1.bf16.msra.mxu0 %v1236_v41 }
 0x51d   :  { %494 = vmatprep.subr.bf16.mxu0 %v1240_v42 }
 0x520   :  { %495 = vmatpush1.bf16.msra.mxu0 %v1244_v46 }
 0x521   :  { %496 = vmatprep.subr.bf16.mxu0 %v1252_v49 }
 0x524   :  { %497 = vmatpush1.bf16.msra.mxu0 %v1254_v52 }
 0x525   :  { %703 = vmatprep.subr.bf16.mxu0 %v1227_v31 }
 0x5d7   :  { %v296_v54 = vpop.f32.mrf.mxu0 }
 0x5d8   :  { %v297_v55 = vadd.f32 %v296_v54, %v1215_v11 }
 0x5d9   :  { %v298_v56 = vpop.f32.mrf.mxu0 }
 0x5da   :  { %v304_v57 = vrot.slane %v297_v55, 4  ;;  %v299_v58 = vadd.f32 %v298_v56, %v1278_v63 }
 0x5db   :  { %v300_v59 = vpop.f32.mrf.mxu0 }
 0x5dc   :  { %340 = vrot.lane.b32.xlu0 %v299_v58, %s1184_s20  ;;  %313 = vrot.lane.b32.xlu1 %v304_v57, %s1181_s19  ;;  %v306_v61 = vadd.f32 %v304_v57, %v1219_v14  ;;  %v1018_v62 = vmul.f32 -1.442695, %v299_v58 }
 0x5dd   :  { %v301_v60 = vpop.f32.mrf.mxu0 }
 0x5de   :  { %v1017_v0 = vmul.f32 -1.442695, %v306_v61  ;;  %1072 = vpow2.f32 %v1018_v62 }
 0x5e0   :  { %1074 = vpow2.f32 %v1017_v0 }
 0x5eb   :  { %v1073_v1 = vpop.eup %1072 }
 0x5ec   :  { %v336_v4 = vadd.f32 1.0, %v1073_v1 }
 0x5ed   :  { %v1075_v3 = vpop.eup %1074 }
 0x5ee   :  { %v310_v5 = vadd.f32 1.0, %v1075_v3  ;;  %1076 = vrcp.f32 %v336_v4 }
 0x5f0   :  { %1078 = vrcp.f32 %v310_v5 }
 0x5fb   :  { %v1077_v6 = vpop.eup %1076 }
 0x5fc   :  { %v350_v27 = vsub.f32 1.0, %v1077_v6  ;;  %v356_v29 = vmul.f32 %v1077_v6, %v1294_v44 }
 0x5fd   :  { %v1079_v7 = vpop.eup %1078 }
 0x5fe   :  { %v323_v21 = vsub.f32 1.0, %v1079_v7  ;;  %v331_v24 = vmul.f32 %v1079_v7, %v329_v20 }
 0x64e   :  { %v341_v8 = vpop.permute.xlu0 %340  ;;  %v314_v2 = vpop.permute.xlu1 %313 }
 0x64f   :  { %v343_v10 = vmul.f32 %v1077_v6, %v341_v8  ;;  %v316_v9 = vmul.f32 %v1079_v7, %v314_v2 }
 0x651   :  { %345 = vrot.lane.b32.xlu0 %v343_v10, %s1181_s19  ;;  %318 = vrot.lane.b32.xlu1 %v316_v9, %s1181_s19 }
 0x6c3   :  { %v346_v12 = vpop.permute.xlu0 %345  ;;  %v319_v13 = vpop.permute.xlu1 %318 }
 0x6c4   :  { %v348_v15 = vadd.f32 %v346_v12, %v299_v58  ;;  %v321_v16 = vadd.f32 %v319_v13, %v1219_v14 }
 0x6c6   :  { %1080 = vtanh.f32 %v348_v15 }
 0x6c7   :  { %1082 = vtanh.f32 %v321_v16 }
 0x6d3   :  { %v1081_v17 = vpop.eup %1080 }
 0x6d4   :  { %v1083_v18 = vpop.eup %1082  ;;  %352 = vrot.lane.b32.xlu0 %v1081_v17, %s1182_s0 }
 0x6d5   :  { %325 = vrot.lane.b32.xlu1 %v1083_v18, %s1182_s0 }
 0x746   :  { %v353_v26 = vpop.permute.xlu0 %352 }
 0x747   :  { %v326_v22 = vpop.permute.xlu1 %325  ;;  %v355_v28 = vmul.f32 %v353_v26, %v350_v27 }
 0x748   :  { %v328_v23 = vmul.f32 %v326_v22, %v323_v21 }
 0x749   :  { %v1324_v30 = vadd.f32 %v356_v29, %v355_v28 }
 0x74a   :  { %v1319_v25 = vadd.f32 %v331_v24, %v328_v23 }
 0x74b   :  { %v363_v32 = vrot.slane %v1324_v30, 4 }
 0x74c   :  { %359 = vrot.lane.b32.xlu1 %v1319_v25, %s1182_s0  ;;  %v439_v2 = vrot.slane %v1319_v25, 6 }
 0x7be   :  { %v360_v33 = vpop.permute.xlu1 %359 }
 0x7bf   :  { %v365_v34 = vsel %vm140_vm2, %v360_v33, %v363_v32 }
 0x7c0   :  { %v366_v37 = vpack.c.bf16 %v365_v34, %v365_v34 }
 0x7c2   :  { %v368_v38 = vrot.slane %v366_v37, 2 }
 0x7c4   :  { %1019 = vmatmul.mubr.msk.bf16.vlgmr.msra.gmra.mxu1 %vm148_vm3, %v368_v38 }
 0x7c5   :  { %594 = vmatpush1.bf16.msra.mxu1 %v1229_v35  ;;  %617 = vmatprep.mubr.bf16.mxu1 %v1183_v53 }
 0x7c6   :  { %595 = vmatprep.subr.bf16.mxu1 %v1231_v36 }
 0x7c9   :  { %596 = vmatpush1.bf16.msra.mxu1 %v1236_v41 }
 0x7ca   :  { %597 = vmatprep.subr.bf16.mxu1 %v1240_v42 }
 0x7cd   :  { %598 = vmatpush1.bf16.msra.mxu1 %v1244_v46 }
 0x7ce   :  { %599 = vmatprep.subr.bf16.mxu1 %v1252_v49 }
 0x7d1   :  { %600 = vmatpush1.bf16.msra.mxu1 %v1254_v52 }
 0x7d2   :  { %813 = vmatprep.subr.bf16.mxu1 %v1227_v31 }
 0x884   :  { %v406_v39 = vpop.f32.mrf.mxu1 }
 0x885   :  { %v407_v40 = vadd.f32 %v406_v39, %v1215_v11 }
 0x886   :  { %v408_v43 = vpop.f32.mrf.mxu1 }
 0x887   :  { %v414_v44 = vrot.slane %v407_v40, 2  ;;  %v409_v45 = vadd.f32 %v408_v43, %v1278_v63 }
 0x888   :  { %v410_v47 = vpop.f32.mrf.mxu1 }
 0x889   :  { %450 = vrot.lane.b32.xlu1 %v409_v45, %s1184_s20  ;;  %423 = vrot.lane.b32.xlu0 %v414_v44, %s1181_s19  ;;  %v416_v50 = vadd.f32 %v414_v44, %v1219_v14  ;;  %v1021_v51 = vmul.f32 -1.442695, %v409_v45 }
 0x88a   :  { %v411_v48 = vpop.f32.mrf.mxu1 }
 0x88b   :  { %v1020_v54 = vmul.f32 -1.442695, %v416_v50  ;;  %1084 = vpow2.f32 %v1021_v51 }
 0x88d   :  { %1086 = vpow2.f32 %v1020_v54 }
 0x898   :  { %v1085_v55 = vpop.eup %1084 }
 0x899   :  { %v446_v57 = vadd.f32 1.0, %v1085_v55 }
 0x89a   :  { %v1087_v56 = vpop.eup %1086 }
 0x89b   :  { %v420_v58 = vadd.f32 1.0, %v1087_v56  ;;  %1088 = vrcp.f32 %v446_v57 }
 0x89d   :  { %1090 = vrcp.f32 %v420_v58 }
 0x8a8   :  { %v1089_v59 = vpop.eup %1088 }
 0x8a9   :  { %v460_v16 = vsub.f32 1.0, %v1089_v59  ;;  %v466_v18 = vmul.f32 %v1089_v59, %v1324_v30 }
 0x8aa   :  { %v1091_v60 = vpop.eup %1090 }
 0x8ab   :  { %v433_v10 = vsub.f32 1.0, %v1091_v60  ;;  %v441_v13 = vmul.f32 %v1091_v60, %v439_v2 }
 0x8fb   :  { %v451_v61 = vpop.permute.xlu1 %450  ;;  %v424_v62 = vpop.permute.xlu0 %423 }
 0x8fc   :  { %v453_v0 = vmul.f32 %v1089_v59, %v451_v61  ;;  %v426_v1 = vmul.f32 %v1091_v60, %v424_v62 }
 0x8fe   :  { %455 = vrot.lane.b32.xlu1 %v453_v0, %s1181_s19  ;;  %428 = vrot.lane.b32.xlu0 %v426_v1, %s1181_s19 }
 0x970   :  { %v456_v3 = vpop.permute.xlu1 %455  ;;  %v429_v4 = vpop.permute.xlu0 %428 }
 0x971   :  { %v458_v5 = vadd.f32 %v456_v3, %v409_v45  ;;  %v431_v6 = vadd.f32 %v429_v4, %v1219_v14 }
 0x973   :  { %1092 = vtanh.f32 %v458_v5 }
 0x974   :  { %1094 = vtanh.f32 %v431_v6 }
 0x980   :  { %v1093_v7 = vpop.eup %1092 }
 0x981   :  { %v1095_v8 = vpop.eup %1094  ;;  %462 = vrot.lane.b32.xlu1 %v1093_v7, %s1182_s0 }
 0x982   :  { %435 = vrot.lane.b32.xlu0 %v1095_v8, %s1182_s0 }
 0x9f3   :  { %v463_v14 = vpop.permute.xlu1 %462 }
 0x9f4   :  { %v436_v9 = vpop.permute.xlu0 %435  ;;  %v465_v17 = vmul.f32 %v463_v14, %v460_v16 }
 0x9f5   :  { %v438_v12 = vmul.f32 %v436_v9, %v433_v10 }
 0x9f6   :  { %v1354_v20 = vadd.f32 %v466_v18, %v465_v17 }
 0x9f7   :  { %v1349_v15 = vadd.f32 %v441_v13, %v438_v12 }
 0x9f8   :  { %v473_v21 = vrot.slane %v1354_v20, 2 }
 0x9f9   :  { %469 = vrot.lane.b32.xlu0 %v1349_v15, %s1182_s0  ;;  %v547_v59 = vrot.slane %v1349_v15, 6 }
 0xa6b   :  { %v470_v22 = vpop.permute.xlu0 %469 }
 0xa6c   :  { %v475_v23 = vsel %vm140_vm2, %v470_v22, %v473_v21 }
 0xa6d   :  { %v476_v24 = vpack.c.bf16 %v475_v23, %v475_v23 }
 0xa6f   :  { %v478_v25 = vrot.slane %v476_v24, 3 }
 0xa71   :  { %1022 = vmatmul.mubr.msk.bf16.vlgmr.msra.gmra.mxu0 %vm148_vm3, %v478_v25 }
 0xa72   :  { %704 = vmatpush1.bf16.msra.mxu0 %v1229_v35  ;;  %727 = vmatprep.mubr.bf16.mxu0 %v1183_v53 }
 0xa73   :  { %705 = vmatprep.subr.bf16.mxu0 %v1231_v36 }
 0xa76   :  { %706 = vmatpush1.bf16.msra.mxu0 %v1236_v41 }
 0xa77   :  { %707 = vmatprep.subr.bf16.mxu0 %v1240_v42 }
 0xa7a   :  { %708 = vmatpush1.bf16.msra.mxu0 %v1244_v46 }
 0xa7b   :  { %709 = vmatprep.subr.bf16.mxu0 %v1252_v49 }
 0xa7e   :  { %710 = vmatpush1.bf16.msra.mxu0 %v1254_v52 }
 0xa7f   :  { %923 = vmatprep.subr.bf16.mxu0 %v1227_v31 }
 0xb31   :  { %v516_v26 = vpop.f32.mrf.mxu0 }
 0xb32   :  { %v517_v27 = vadd.f32 %v516_v26, %v1215_v11 }
 0xb33   :  { %v518_v28 = vpop.f32.mrf.mxu0 }
 0xb34   :  { %v519_v29 = vadd.f32 %v518_v28, %v1278_v63  ;;  %531 = vrot.lane.b32.xlu1 %v517_v27, %s1181_s19  ;;  %v523_v33 = vadd.f32 %v517_v27, %v1223_v19 }
 0xb35   :  { %v520_v30 = vpop.f32.mrf.mxu0 }
 0xb36   :  { %558 = vrot.lane.b32.xlu0 %v519_v29, %s1184_s20  ;;  %v1023_v34 = vmul.f32 -1.442695, %v523_v33  ;;  %v1024_v37 = vmul.f32 -1.442695, %v519_v29 }
 0xb37   :  { %v521_v32 = vpop.f32.mrf.mxu0 }
 0xb38   :  { %1096 = vpow2.f32 %v1023_v34 }
 0xb39   :  { %1098 = vpow2.f32 %v1024_v37 }
 0xb45   :  { %v1097_v38 = vpop.eup %1096 }
 0xb46   :  { %v1099_v31 = vpop.eup %1098  ;;  %v527_v39 = vadd.f32 1.0, %v1097_v38 }
 0xb47   :  { %v554_v40 = vadd.f32 1.0, %v1099_v31 }
 0xb48   :  { %1100 = vrcp.f32 %v527_v39 }
 0xb49   :  { %1102 = vrcp.f32 %v554_v40 }
 0xb55   :  { %v1101_v43 = vpop.eup %1100 }
 0xb56   :  { %v1103_v47 = vpop.eup %1102  ;;  %v541_v60 = vsub.f32 1.0, %v1101_v43  ;;  %v549_v0 = vmul.f32 %v1101_v43, %v547_v59 }
 0xb57   :  { %v568_v4 = vsub.f32 1.0, %v1103_v47  ;;  %v574_v6 = vmul.f32 %v1103_v47, %v1354_v20 }
 0xba6   :  { %v532_v44 = vpop.permute.xlu1 %531 }
 0xba7   :  { %v534_v45 = vmul.f32 %v1101_v43, %v532_v44 }
 0xba8   :  { %v559_v48 = vpop.permute.xlu0 %558 }
 0xba9   :  { %v561_v50 = vmul.f32 %v1103_v47, %v559_v48  ;;  %536 = vrot.lane.b32.xlu1 %v534_v45, %s1181_s19 }
 0xbab   :  { %563 = vrot.lane.b32.xlu0 %v561_v50, %s1181_s19 }
 0xc1b   :  { %v537_v51 = vpop.permute.xlu1 %536 }
 0xc1c   :  { %v539_v54 = vadd.f32 %v537_v51, %v1223_v19 }
 0xc1d   :  { %v564_v55 = vpop.permute.xlu0 %563 }
 0xc1e   :  { %1104 = vtanh.f32 %v539_v54  ;;  %v566_v56 = vadd.f32 %v564_v55, %v519_v29 }
 0xc20   :  { %1106 = vtanh.f32 %v566_v56 }
 0xc2b   :  { %v1105_v57 = vpop.eup %1104 }
 0xc2c   :  { %543 = vrot.lane.b32.xlu1 %v1105_v57, %s1182_s0 }
 0xc2d   :  { %v1107_v58 = vpop.eup %1106 }
 0xc2e   :  { %570 = vrot.lane.b32.xlu0 %v1107_v58, %s1182_s0 }
 0xc9e   :  { %v544_v61 = vpop.permute.xlu1 %543 }
 0xc9f   :  { %v546_v62 = vmul.f32 %v544_v61, %v541_v60 }
 0xca0   :  { %v571_v3 = vpop.permute.xlu0 %570 }
 0xca1   :  { %v550_v1 = vadd.f32 %v549_v0, %v546_v62  ;;  %v573_v5 = vmul.f32 %v571_v3, %v568_v4 }
 0xca3   :  { %577 = vrot.lane.b32.xlu1 %v550_v1, %s1182_s0  ;;  %v575_v7 = vadd.f32 %v574_v6, %v573_v5  ;;  %v652_v40 = vrot.slane %v550_v1, 6 }
 0xd15   :  { %v578_v8 = vpop.permute.xlu1 %577 }
 0xd16   :  { %v580_v2 = vsel %vm140_vm2, %v578_v8, %v575_v7 }
 0xd17   :  { %v581_v10 = vpack.c.bf16 %v580_v2, %v580_v2 }
 0xd19   :  { %1025 = vmatmul.mubr.msk.bf16.vlgmr.msra.gmra.mxu1 %vm148_vm3, %v581_v10 }
 0xd1a   :  { %814 = vmatpush1.bf16.msra.mxu1 %v1229_v35  ;;  %837 = vmatprep.mubr.bf16.mxu1 %v1183_v53 }
 0xd1b   :  { %815 = vmatprep.subr.bf16.mxu1 %v1231_v36 }
 0xd1e   :  { %816 = vmatpush1.bf16.msra.mxu1 %v1236_v41 }
 0xd1f   :  { %817 = vmatprep.subr.bf16.mxu1 %v1240_v42 }
 0xd22   :  { %818 = vmatpush1.bf16.msra.mxu1 %v1244_v46 }
 0xd23   :  { %819 = vmatprep.subr.bf16.mxu1 %v1252_v49 }
 0xd26   :  { %820 = vmatpush1.bf16.msra.mxu1 %v1254_v52 }
 0xdd9   :  { %v619_v9 = vpop.f32.mrf.mxu1 }
 0xdda   :  { %v620_v12 = vadd.f32 %v619_v9, %v1215_v11 }
 0xddb   :  { %v621_v13 = vpop.f32.mrf.mxu1 }
 0xddc   :  { %v627_v15 = vrot.slane %v620_v12, 6  ;;  %v622_v14 = vadd.f32 %v621_v13, %v1278_v63 }
 0xddd   :  { %v623_v16 = vpop.f32.mrf.mxu1 }
 0xdde   :  { %663 = vrot.lane.b32.xlu1 %v622_v14, %s1184_s20  ;;  %636 = vrot.lane.b32.xlu0 %v627_v15, %s1181_s19  ;;  %v629_v18 = vadd.f32 %v627_v15, %v1223_v19  ;;  %v1027_v20 = vmul.f32 -1.442695, %v622_v14 }
 0xddf   :  { %v624_v17 = vpop.f32.mrf.mxu1 }
 0xde0   :  { %v1026_v21 = vmul.f32 -1.442695, %v629_v18  ;;  %1108 = vpow2.f32 %v1027_v20 }
 0xde2   :  { %1110 = vpow2.f32 %v1026_v21 }
 0xded   :  { %v1109_v22 = vpop.eup %1108 }
 0xdee   :  { %v659_v24 = vadd.f32 1.0, %v1109_v22 }
 0xdef   :  { %v1111_v23 = vpop.eup %1110 }
 0xdf0   :  { %v633_v25 = vadd.f32 1.0, %v1111_v23  ;;  %1112 = vrcp.f32 %v659_v24 }
 0xdf2   :  { %1114 = vrcp.f32 %v633_v25 }
 0xdfd   :  { %v1113_v26 = vpop.eup %1112 }
 0xdfe   :  { %v673_v51 = vsub.f32 1.0, %v1113_v26  ;;  %v679_v55 = vmul.f32 %v1113_v26, %v575_v7 }
 0xdff   :  { %v1115_v27 = vpop.eup %1114 }
 0xe00   :  { %v646_v43 = vsub.f32 1.0, %v1115_v27  ;;  %v654_v47 = vmul.f32 %v1115_v27, %v652_v40 }
 0xe50   :  { %v664_v28 = vpop.permute.xlu1 %663  ;;  %v637_v29 = vpop.permute.xlu0 %636 }
 0xe51   :  { %v666_v30 = vmul.f32 %v1113_v26, %v664_v28  ;;  %v639_v32 = vmul.f32 %v1115_v27, %v637_v29 }
 0xe53   :  { %668 = vrot.lane.b32.xlu1 %v666_v30, %s1181_s19  ;;  %641 = vrot.lane.b32.xlu0 %v639_v32, %s1181_s19 }
 0xec5   :  { %v669_v33 = vpop.permute.xlu1 %668  ;;  %v642_v34 = vpop.permute.xlu0 %641 }
 0xec6   :  { %v671_v37 = vadd.f32 %v669_v33, %v622_v14  ;;  %v644_v38 = vadd.f32 %v642_v34, %v1223_v19 }
 0xec8   :  { %1116 = vtanh.f32 %v671_v37 }
 0xec9   :  { %1118 = vtanh.f32 %v644_v38 }
 0xed5   :  { %v1117_v31 = vpop.eup %1116 }
 0xed6   :  { %v1119_v39 = vpop.eup %1118  ;;  %675 = vrot.lane.b32.xlu1 %v1117_v31, %s1182_s0 }
 0xed7   :  { %648 = vrot.lane.b32.xlu0 %v1119_v39, %s1182_s0 }
 0xf48   :  { %v676_v50 = vpop.permute.xlu1 %675 }
 0xf49   :  { %v649_v44 = vpop.permute.xlu0 %648  ;;  %v678_v54 = vmul.f32 %v676_v50, %v673_v51 }
 0xf4a   :  { %v651_v45 = vmul.f32 %v649_v44, %v646_v43 }
 0xf4b   :  { %v1405_v56 = vadd.f32 %v679_v55, %v678_v54 }
 0xf4c   :  { %v1401_v48 = vadd.f32 %v654_v47, %v651_v45 }
 0xf4d   :  { %v686_v57 = vrot.slane %v1405_v56, 6 }
 0xf4e   :  { %682 = vrot.lane.b32.xlu0 %v1401_v48, %s1182_s0  ;;  %v762_v18 = vrot.slane %v1401_v48, 6 }
 0xfc0   :  { %v683_v58 = vpop.permute.xlu0 %682 }
 0xfc1   :  { %v688_v59 = vsel %vm140_vm2, %v683_v58, %v686_v57 }
 0xfc2   :  { %v689_v60 = vpack.c.bf16 %v688_v59, %v688_v59 }
 0xfc4   :  { %v691_v61 = vrot.slane %v689_v60, 1 }
 0xfc6   :  { %1028 = vmatmul.mubr.msk.bf16.vlgmr.msra.gmra.mxu0 %vm148_vm3, %v691_v61 }
 0xfc7   :  { %924 = vmatpush1.bf16.msra.mxu0 %v1229_v35  ;;  %947 = vmatprep.mubr.bf16.mxu0 %v1183_v53 }
 0xfc8   :  { %925 = vmatprep.subr.bf16.mxu0 %v1231_v36 }
 0xfcb   :  { %926 = vmatpush1.bf16.msra.mxu0 %v1236_v41 }
 0xfcc   :  { %927 = vmatprep.subr.bf16.mxu0 %v1240_v42 }
 0xfcf   :  { %928 = vmatpush1.bf16.msra.mxu0 %v1244_v46 }
 0xfd0   :  { %929 = vmatprep.subr.bf16.mxu0 %v1252_v49 }
 0xfd3   :  { %930 = vmatpush1.bf16.msra.mxu0 %v1254_v52 }
0x1086   :  { %v729_v62 = vpop.f32.mrf.mxu0 }
0x1087   :  { %v730_v0 = vadd.f32 %v729_v62, %v1215_v11 }
0x1088   :  { %v731_v1 = vpop.f32.mrf.mxu0 }
0x1089   :  { %v737_v3 = vrot.slane %v730_v0, 4  ;;  %v732_v35 = vadd.f32 %v731_v1, %v1278_v63 }
0x108a   :  { %v733_v53 = vpop.f32.mrf.mxu0 }
0x108b   :  { %773 = vrot.lane.b32.xlu0 %v732_v35, %s1184_s20  ;;  %746 = vrot.lane.b32.xlu1 %v737_v3, %s1181_s19  ;;  %v739_v41 = vadd.f32 %v737_v3, %v1223_v19  ;;  %v1030_v42 = vmul.f32 -1.442695, %v732_v35 }
0x108c   :  { %v734_v36 = vpop.f32.mrf.mxu0 }
0x108d   :  { %v1029_v46 = vmul.f32 -1.442695, %v739_v41  ;;  %1120 = vpow2.f32 %v1030_v42 }
0x108f   :  { %1122 = vpow2.f32 %v1029_v46 }
0x109a   :  { %v1121_v49 = vpop.eup %1120 }
0x109b   :  { %v769_v4 = vadd.f32 1.0, %v1121_v49 }
0x109c   :  { %v1123_v52 = vpop.eup %1122 }
0x109d   :  { %v743_v5 = vadd.f32 1.0, %v1123_v52  ;;  %1124 = vrcp.f32 %v769_v4 }
0x109f   :  { %1126 = vrcp.f32 %v743_v5 }
0x10aa   :  { %v1125_v6 = vpop.eup %1124 }
0x10ab   :  { %v783_v26 = vsub.f32 1.0, %v1125_v6  ;;  %v789_v28 = vmul.f32 %v1125_v6, %v1405_v56 }
0x10ac   :  { %v1127_v7 = vpop.eup %1126 }
0x10ad   :  { %v756_v20 = vsub.f32 1.0, %v1127_v7  ;;  %v764_v23 = vmul.f32 %v1127_v7, %v762_v18 }
0x10fd   :  { %v774_v8 = vpop.permute.xlu0 %773  ;;  %v747_v2 = vpop.permute.xlu1 %746 }
0x10fe   :  { %v776_v10 = vmul.f32 %v1125_v6, %v774_v8  ;;  %v749_v9 = vmul.f32 %v1127_v7, %v747_v2 }
0x1100   :  { %778 = vrot.lane.b32.xlu0 %v776_v10, %s1181_s19  ;;  %751 = vrot.lane.b32.xlu1 %v749_v9, %s1181_s19 }
0x1172   :  { %v779_v12 = vpop.permute.xlu0 %778  ;;  %v752_v13 = vpop.permute.xlu1 %751 }
0x1173   :  { %v781_v15 = vadd.f32 %v779_v12, %v732_v35  ;;  %v754_v14 = vadd.f32 %v752_v13, %v1223_v19 }
0x1175   :  { %1128 = vtanh.f32 %v781_v15 }
0x1176   :  { %1130 = vtanh.f32 %v754_v14 }
0x1182   :  { %v1129_v16 = vpop.eup %1128 }
0x1183   :  { %v1131_v17 = vpop.eup %1130  ;;  %785 = vrot.lane.b32.xlu0 %v1129_v16, %s1182_s0 }
0x1184   :  { %758 = vrot.lane.b32.xlu1 %v1131_v17, %s1182_s0 }
0x11f5   :  { %v786_v25 = vpop.permute.xlu0 %785 }
0x11f6   :  { %v759_v21 = vpop.permute.xlu1 %758  ;;  %v788_v27 = vmul.f32 %v786_v25, %v783_v26  ;;  %v53_v25 = vld [vmem:[#allocation2 + $0x82] ss:$0 sm:$0xff] }
0x11f7   :  { %v761_v22 = vmul.f32 %v759_v21, %v756_v20 }
0x11f8   :  { %v790_v29 = vadd.f32 %v789_v28, %v788_v27 }
0x11f9   :  { %v765_v24 = vadd.f32 %v764_v23, %v761_v22 }
0x11fa   :  { %v796_v30 = vrot.slane %v790_v29, 4 }
0x11fb   :  { %792 = vrot.lane.b32.xlu1 %v765_v24, %s1182_s0  ;;  %v872_v36 = vrot.slane %v765_v24, 6 }
0x126d   :  { %v793_v32 = vpop.permute.xlu1 %792 }
0x126e   :  { %v798_v33 = vsel %vm140_vm2, %v793_v32, %v796_v30 }
0x126f   :  { %v799_v34 = vpack.c.bf16 %v798_v33, %v798_v33 }
0x1271   :  { %v801_v37 = vrot.slane %v799_v34, 2 }
0x1273   :  { %1031 = vmatmul.mubr.msk.bf16.vlgmr.msra.gmra.mxu1 %vm148_vm3, %v801_v37 }
0x1333   :  { %v839_v38 = vpop.f32.mrf.mxu1 }
0x1334   :  { %v840_v31 = vadd.f32 %v839_v38, %v1215_v11 }
0x1335   :  { %v841_v39 = vpop.f32.mrf.mxu1 }
0x1336   :  { %v847_v40 = vrot.slane %v840_v31, 2  ;;  %v842_v43 = vadd.f32 %v841_v39, %v1278_v63 }
0x1337   :  { %v843_v44 = vpop.f32.mrf.mxu1 }
0x1338   :  { %883 = vrot.lane.b32.xlu1 %v842_v43, %s1184_s20  ;;  %856 = vrot.lane.b32.xlu0 %v847_v40, %s1181_s19  ;;  %v849_v47 = vadd.f32 %v847_v40, %v1223_v19  ;;  %v1033_v48 = vmul.f32 -1.442695, %v842_v43 }
0x1339   :  { %v844_v45 = vpop.f32.mrf.mxu1 }
0x133a   :  { %v1032_v50 = vmul.f32 -1.442695, %v849_v47  ;;  %1132 = vpow2.f32 %v1033_v48 }
0x133c   :  { %1134 = vpow2.f32 %v1032_v50 }
0x1347   :  { %v1133_v51 = vpop.eup %1132 }
0x1348   :  { %v879_v55 = vadd.f32 1.0, %v1133_v51 }
0x1349   :  { %v1135_v54 = vpop.eup %1134 }
0x134a   :  { %v853_v11 = vadd.f32 1.0, %v1135_v54  ;;  %1136 = vrcp.f32 %v879_v55 }
0x134c   :  { %1138 = vrcp.f32 %v853_v11 }
0x1357   :  { %v1137_v56 = vpop.eup %1136 }
0x1358   :  { %v893_v5 = vsub.f32 1.0, %v1137_v56 }
0x1359   :  { %v1139_v57 = vpop.eup %1138 }
0x135a   :  { %v866_v41 = vsub.f32 1.0, %v1139_v57  ;;  %v874_v49 = vmul.f32 %v1139_v57, %v872_v36 }
0x13aa   :  { %v884_v58 = vpop.permute.xlu1 %883  ;;  %v857_v59 = vpop.permute.xlu0 %856 }
0x13ab   :  { %v886_v60 = vmul.f32 %v1137_v56, %v884_v58  ;;  %v859_v61 = vmul.f32 %v1139_v57, %v857_v59 }
0x13ad   :  { %888 = vrot.lane.b32.xlu1 %v886_v60, %s1181_s19  ;;  %861 = vrot.lane.b32.xlu0 %v859_v61, %s1181_s19 }
0x141f   :  { %v889_v62 = vpop.permute.xlu1 %888  ;;  %v862_v0 = vpop.permute.xlu0 %861 }
0x1420   :  { %v891_v1 = vadd.f32 %v889_v62, %v842_v43  ;;  %v864_v3 = vadd.f32 %v862_v0, %v1223_v19  ;;  %v899_v19 = vmul.f32 %v1137_v56, %v790_v29 }
0x1422   :  { %1140 = vtanh.f32 %v891_v1 }
0x1423   :  { %1142 = vtanh.f32 %v864_v3 }
0x142f   :  { %v1141_v35 = vpop.eup %1140 }
0x1430   :  { %v1143_v53 = vpop.eup %1142  ;;  %895 = vrot.lane.b32.xlu1 %v1141_v35, %s1182_s0 }
0x1431   :  { %868 = vrot.lane.b32.xlu0 %v1143_v53, %s1182_s0 }
0x14a2   :  { %v896_v4 = vpop.permute.xlu1 %895 }
0x14a3   :  { %v869_v42 = vpop.permute.xlu0 %868  ;;  %v898_v6 = vmul.f32 %v896_v4, %v893_v5 }
0x14a4   :  { %v871_v46 = vmul.f32 %v869_v42, %v866_v41 }
0x14a5   :  { %v900_v7 = vadd.f32 %v899_v19, %v898_v6 }
0x14a6   :  { %v875_v52 = vadd.f32 %v874_v49, %v871_v46 }
0x14a7   :  { %v906_v8 = vrot.slane %v900_v7, 2 }
0x14a8   :  { %902 = vrot.lane.b32.xlu0 %v875_v52, %s1182_s0 }
0x151a   :  { %v903_v2 = vpop.permute.xlu0 %902 }
0x151b   :  { %v908_v10 = vsel %vm140_vm2, %v903_v2, %v906_v8 }
0x151c   :  { %v909_v9 = vpack.c.bf16 %v908_v10, %v908_v10 }
0x151e   :  { %v911_v12 = vrot.slane %v909_v9, 3 }
0x1520   :  { %1034 = vmatmul.mubr.msk.bf16.vlgmr.msra.gmra.mxu0 %vm148_vm3, %v911_v12 }
0x15e0   :  { %v949_v13 = vpop.f32.mrf.mxu0 }
0x15e2   :  { %v950_v15 = vpop.f32.mrf.mxu0 }
0x15e3   :  { %v951_v14 = vadd.f32 %v950_v15, %v1278_v63 }
0x15e4   :  { %v952_v16 = vpop.f32.mrf.mxu0 }
0x15e5   :  { %962 = vrot.lane.b32.xlu1 %v951_v14, %s1184_s20  ;;  %v1035_v18 = vmul.f32 -1.442695, %v951_v14 }
0x15e6   :  { %v953_v17 = vpop.f32.mrf.mxu0 }
0x15e7   :  { %1144 = vpow2.f32 %v1035_v18 }
0x15f4   :  { %v1145_v20 = vpop.eup %1144 }
0x15f5   :  { %v958_v21 = vadd.f32 1.0, %v1145_v20 }
0x15f7   :  { %1146 = vrcp.f32 %v958_v21 }
0x1604   :  { %v1147_v22 = vpop.eup %1146 }
0x1605   :  { %v972_v28 = vsub.f32 1.0, %v1147_v22  ;;  %v978_v32 = vmul.f32 %v1147_v22, %v900_v7 }
0x1657   :  { %v963_v23 = vpop.permute.xlu1 %962 }
0x1658   :  { %v965_v24 = vmul.f32 %v1147_v22, %v963_v23 }
0x165a   :  { %967 = vrot.lane.b32.xlu0 %v965_v24, %s1181_s19 }
0x165e   :  { %981 = vrot.lane.b32.xlu0 %v53_v25, %s1184_s20 }
0x16cc   :  { %v968_v26 = vpop.permute.xlu0 %967 }
0x16cd   :  { %v970_v27 = vadd.f32 %v968_v26, %v951_v14 }
0x16cf   :  { %1148 = vtanh.f32 %v970_v27 }
0x16d0   :  { %v982_v33 = vpop.permute.xlu0 %981 }
0x16dc   :  { %v1149_v63 = vpop.eup %1148 }
0x16dd   :  { %974 = vrot.lane.b32.xlu1 %v1149_v63, %s1182_s0 }
0x174f   :  { %v975_v29 = vpop.permute.xlu1 %974 }
0x1750   :  { %v977_v30 = vmul.f32 %v975_v29, %v972_v28 }
0x1752   :  { %v979_v34 = vadd.f32 %v978_v32, %v977_v30 }
0x1754   :  { %v984_v37 = vmul.f32 %v982_v33, %v979_v34 }
0x1756   :  { %986 = vrot.lane.b32.xlu1 %v984_v37, %s1182_s0 }
0x17c8   :  { %v987_v38 = vpop.permute.xlu1 %986 }
0x17c9   :  { %v990_v31 = vsel %vm989_vm4, %v987_v38, 0.0 }
0x17ca   :  { %991 = vadd.xlane.f32.xlu0 %v990_v31 }
0x1853   :  { %v992_v39 = vpop.xlane.xlu0 %991 }
0x1854   :  { %v993_v40 = vadd.f32 %v992_v39, %v53_v25 }
0x1856   :  { %v1036_v43 = vmul.f32 -1.442695, %v993_v40 }
0x1858   :  { %1150 = vpow2.f32 %v1036_v43 }
0x1865   :  { %v1151_v44 = vpop.eup %1150 }
0x1866   :  { %v997_v45 = vadd.f32 1.0, %v1151_v44 }
0x1868   :  { %1152 = vrcp.f32 %v997_v45 }
0x1875   :  { %v1153_v47 = vpop.eup %1152 }
0x1876   :  { %1001 = vrot.lane.b32.xlu1 %v1153_v47, %s1182_s0 }
0x18e8   :  { %v1002_v48 = vpop.permute.xlu1 %1001 }
0x18e9   :  { %1005 = vst.msk [vmem:[%s1458_s2] sm:$0x3] %vm1004_vm5, %v1002_v48 }
0x18ea   :  { %1010 = vsyncpa [#allocation3], 1 }

</bundles_post_ra>
